<compile_context>
chip_gen: v7x
topology: tpu7x:2x2x1
jax: 0.10.0
libtpu: 0.0.40
codegen_flags: <defaults>
</compile_context>

<pallas_src>
import jax
import jax.numpy as jnp
from jax.experimental import pallas as pl
from jax.experimental.pallas import tpu as pltpu


def make_kernel(N, H, W, CIN, CMID, COUT, eps):
    HW = H * W
    RIN, RMID, ROUT = N * CIN, N * CMID, N * COUT
    inv_count = 1.0 / float(N * HW)          # BN batch-stat denominator (biased var)

    def shift_cols(a, d, rows):
        # b[:, p] = a[:, p + d] if 0 <= p + d < HW else 0   (d is a static Python int)
        if d == 0:
            return a
        if d > 0:
            return jnp.concatenate(
                [a[:, d:], jnp.zeros((rows, d), jnp.float32)], axis=1)
        return jnp.concatenate(
            [jnp.zeros((rows, -d), jnp.float32), a[:, :HW + d]], axis=1)

    def fold_batch(v, c):
        # (N*c, 1) -> (c, 1): sum the per-batch row blocks
        out = v[0:c, :]
        for n in range(1, N):
            out = out + v[n * c:(n + 1) * c, :]
        return out

    def tile_batch(v):
        # (c, 1) -> (N*c, 1)
        return jnp.concatenate([v] * N, axis=0) if N > 1 else v

    def batchnorm_relu(a, c, g, b):
        # training-mode BatchNorm2d (per-channel stats over N,H,W) + ReLU.
        # Reductions use the idle MXU (dot with a ones column), two-pass variance.
        ones_col = jnp.ones((HW, 1), jnp.float32)
        s = jnp.dot(a, ones_col, preferred_element_type=jnp.float32)      # (rows,1)
        mean_c = fold_batch(s, c) * inv_count                             # (c,1)
        ac = a - tile_batch(mean_c)
        q = jnp.dot(ac * ac, ones_col, preferred_element_type=jnp.float32)
        var_c = fold_batch(q, c) * inv_count
        scale_c = g * jax.lax.rsqrt(var_c + eps)
        return jnp.maximum(ac * tile_batch(scale_c) + tile_batch(b), 0.0)

    def kernel(x_ref, w1_ref, w2_ref, m_ref, g1_ref, b1_ref, g2_ref, b2_ref, o_ref):
        x = x_ref[...]                                      # (N*CIN, HW)

        # ---- conv1 (3x3, pad=1, bias=False); `* 2` already folded into w1 ----
        # 9 taps: shift the small input slab, mask row-wrap columns, small matmul.
        h = jnp.zeros((RMID, HW), jnp.float32)
        for k in range(9):
            dy, dx = k // 3 - 1, k % 3 - 1
            d = dy * W + dx
            xs = shift_cols(x, d, RIN) * m_ref[k]           # (N*CIN, HW)
            h = h + jnp.dot(w1_ref[k], xs, preferred_element_type=jnp.float32)

        # ---- BN1 + ReLU (channels on sublanes, HW dense on lanes) ----
        h = batchnorm_relu(h, CMID, g1_ref[...], b1_ref[...])

        # ---- conv2 (3x3, pad=1, bias=False): matmul-first, shift the small result ----
        y = jnp.zeros((ROUT, HW), jnp.float32)
        for k in range(9):
            dy, dx = k // 3 - 1, k % 3 - 1
            d = dy * W + dx
            z = jnp.dot(w2_ref[k], h, preferred_element_type=jnp.float32)  # (N*COUT, HW)
            y = y + shift_cols(z, d, ROUT) * m_ref[k]

        # ---- BN2 + ReLU ----
        y = batchnorm_relu(y, COUT, g2_ref[...], b2_ref[...])

        # Lane-dense output store; the wrapper turns it into NCHW with a pure reshape.
        o_ref[...] = y

    return kernel


def base_module_forward(x_nchw, params, eps=1e-5):
    N, CIN, H, W = x_nchw.shape
    CMID = params["w1"].shape[0]   # 32
    COUT = params["w2"].shape[0]   # 3
    HW = H * W

    # NCHW -> (N*C, H*W) is a pure reshape (no XLA transpose / HBM relayout).
    x2d = x_nchw.reshape(N * CIN, HW).astype(jnp.float32)

    # Conv taps -> batch-block-diagonal matrices: block-diag == kron(eye(N), tap).
    # The forward's `x * 2` is folded into the conv1 weights (conv is linear).
    eye_n = jnp.eye(N, dtype=jnp.float32)
    w1taps = jnp.transpose(params["w1"], (2, 3, 0, 1)).reshape(9, CMID, CIN)
    w2taps = jnp.transpose(params["w2"], (2, 3, 0, 1)).reshape(9, COUT, CMID)
    w1blk = 2.0 * jax.vmap(lambda t: jnp.kron(eye_n, t))(w1taps)   # (9, N*CMID, N*CIN)
    w2blk = jax.vmap(lambda t: jnp.kron(eye_n, t))(w2taps)         # (9, N*COUT, N*CMID)

    # Per-tap validity masks over the flat row-major spatial axis (implements the
    # zero padding / prevents row wrap-around); computed once, tiny (9 x 256 f32).
    yy = jnp.repeat(jnp.arange(H), W).reshape(1, HW)
    xx = jnp.tile(jnp.arange(W), H).reshape(1, HW)
    masks = []
    for k in range(9):
        dy, dx = k // 3 - 1, k % 3 - 1
        ok = (yy + dy >= 0) & (yy + dy < H) & (xx + dx >= 0) & (xx + dx < W)
        masks.append(ok.astype(jnp.float32))
    masks = jnp.stack(masks, axis=0).reshape(9, 1, HW)

    g1 = params["g1"].reshape(CMID, 1).astype(jnp.float32)
    b1 = params["b1"].reshape(CMID, 1).astype(jnp.float32)
    g2 = params["g2"].reshape(COUT, 1).astype(jnp.float32)
    b2 = params["b2"].reshape(COUT, 1).astype(jnp.float32)

    kernel = make_kernel(N, H, W, CIN, CMID, COUT, eps)
    vmem = lambda: pl.BlockSpec(memory_space=pltpu.MemorySpace.VMEM)

    # TODO(synk): at this size (M = N*H*W = 512, <1 MiB VMEM) a single grid-less
    # invocation is fastest; for much larger N*H*W, tile the HW axis with a grid
    # and dimension_semantics=("parallel",) so v7x's second TensorCore is used
    # and tiles stay under its 64 MiB VMEM.
    y2d = pl.pallas_call(
        kernel,
        out_shape=jax.ShapeDtypeStruct((N * COUT, HW), jnp.float32),
        in_specs=[vmem() for _ in range(8)],
        out_specs=vmem(),
    )(x2d, w1blk, w2blk, masks, g1, b1, g2, b2)

    # (N*COUT, H*W) -> NCHW is again a pure reshape.
    y_nchw = y2d.reshape(N, COUT, H, W)
    # forward returns (x, x): same tensor twice, exactly like the module.
    return y_nchw, y_nchw


def reference_forward(x_nchw, params, eps=1e-5):
    # Pure-JAX (XLA) reference with identical semantics, for a sanity check.
    def conv(x, w):
        return jax.lax.conv_general_dilated(
            x, w, window_strides=(1, 1), padding=((1, 1), (1, 1)),
            dimension_numbers=("NCHW", "OIHW", "NCHW"))

    def bn(x, g, b):
        mean = jnp.mean(x, axis=(0, 2, 3), keepdims=True)
        var = jnp.mean((x - mean) ** 2, axis=(0, 2, 3), keepdims=True)
        return ((x - mean) * jax.lax.rsqrt(var + eps)
                * g.reshape(1, -1, 1, 1) + b.reshape(1, -1, 1, 1))

    h = conv(x_nchw, params["w1"]) * 2.0
    h = jnp.maximum(bn(h, params["g1"], params["b1"]), 0.0)
    y = conv(h, params["w2"])
    y = jnp.maximum(bn(y, params["g2"], params["b2"]), 0.0)
    return y


if __name__ == "__main__":
    key = jax.random.PRNGKey(0)
    k_x, k_w1, k_w2 = jax.random.split(key, 3)

    N, CIN, H, W = 2, 3, 16, 16
    CMID, COUT = 32, 3

    x = jax.random.normal(k_x, (N, CIN, H, W), dtype=jnp.float32)

    params = {
        # deterministic synthetic weights (shapes from nn.Conv2d / nn.BatchNorm2d)
        "w1": 0.1 * jax.random.normal(k_w1, (CMID, CIN, 3, 3), dtype=jnp.float32),
        "w2": 0.1 * jax.random.normal(k_w2, (COUT, CMID, 3, 3), dtype=jnp.float32),
        "g1": jnp.ones((CMID,), jnp.float32),   # BN weight init = 1
        "b1": jnp.zeros((CMID,), jnp.float32),  # BN bias init = 0
        "g2": jnp.ones((COUT,), jnp.float32),
        "b2": jnp.zeros((COUT,), jnp.float32),
    }

    y1, y2 = base_module_forward(x, params)
    jax.block_until_ready((y1, y2))

    assert y1.shape == (N, COUT, H, W) and y2.shape == (N, COUT, H, W)
    assert bool(jnp.all(jnp.isfinite(y1)))

    y_ref = reference_forward(x, params)
    jax.block_until_ready(y_ref)
    max_err = float(jnp.max(jnp.abs(y1 - y_ref)))
    assert max_err < 1e-3, f"mismatch vs reference: {max_err}"

    print("KERNEL_OK")
</pallas_src>

<mosaic_0001>
module attributes {stable_mosaic.version = 11 : i64} {
  func.func @kernel(%arg0: memref<6x256xf32, #tpu.memory_space<vmem>>, %arg1: memref<9x64x6xf32, #tpu.memory_space<vmem>>, %arg2: memref<9x6x64xf32, #tpu.memory_space<vmem>>, %arg3: memref<9x1x256xf32, #tpu.memory_space<vmem>>, %arg4: memref<32x1xf32, #tpu.memory_space<vmem>>, %arg5: memref<32x1xf32, #tpu.memory_space<vmem>>, %arg6: memref<3x1xf32, #tpu.memory_space<vmem>>, %arg7: memref<3x1xf32, #tpu.memory_space<vmem>>, %arg8: memref<6x256xf32, #tpu.memory_space<vmem>>) attributes {dimension_semantics = [], scalar_prefetch = 0 : i64, scratch_operands = 0 : i64, tpu.core_type = #tpu.core_type<tc>} {
    %c0 = arith.constant 0 : index
    %c0_0 = arith.constant 0 : index
    %0 = vector.load %arg0[%c0, %c0_0] : memref<6x256xf32, #tpu.memory_space<vmem>>, vector<6x256xf32>
    %cst = arith.constant 0.000000e+00 : f32
    %1 = vector.broadcast %cst : f32 to vector<64x256xf32>
    %cst_1 = arith.constant 0.000000e+00 : f32
    %2 = vector.broadcast %cst_1 : f32 to vector<6x17xf32>
    %3 = vector.extract_strided_slice %0 {offsets = [0, 0], sizes = [6, 239], strides = [1, 1]} : vector<6x256xf32> to vector<6x239xf32>
    %4 = tpu.concatenate %2, %3 in 1 : vector<6x17xf32>, vector<6x239xf32> -> vector<6x256xf32>
    %c0_2 = arith.constant 0 : index
    %c0_3 = arith.constant 0 : index
    %c0_4 = arith.constant 0 : index
    %5 = vector.load %arg3[%c0_2, %c0_3, %c0_4] : memref<9x1x256xf32, #tpu.memory_space<vmem>>, vector<1x1x256xf32>
    %6 = vector.shape_cast %5 : vector<1x1x256xf32> to vector<1x256xf32>
    %7 = vector.broadcast %6 : vector<1x256xf32> to vector<6x256xf32>
    %8 = arith.mulf %4, %7 : vector<6x256xf32>
    %c0_5 = arith.constant 0 : index
    %c0_6 = arith.constant 0 : index
    %c0_7 = arith.constant 0 : index
    %9 = vector.load %arg1[%c0_5, %c0_6, %c0_7] : memref<9x64x6xf32, #tpu.memory_space<vmem>>, vector<1x64x6xf32>
    %10 = vector.shape_cast %9 : vector<1x64x6xf32> to vector<64x6xf32>
    %cst_8 = arith.constant dense<0.000000e+00> : vector<64x256xf32>
    %11 = tpu.matmul %10, %8, %cst_8 {dimension_numbers = #tpu.dot_dimension_numbers<[1], [0], [0], [1], [0, 0, 1, 1], [], []>} : vector<64x6xf32>, vector<6x256xf32>, vector<64x256xf32> -> vector<64x256xf32>
    %12 = arith.addf %1, %11 : vector<64x256xf32>
    %cst_9 = arith.constant 0.000000e+00 : f32
    %13 = vector.broadcast %cst_9 : f32 to vector<6x16xf32>
    %14 = vector.extract_strided_slice %0 {offsets = [0, 0], sizes = [6, 240], strides = [1, 1]} : vector<6x256xf32> to vector<6x240xf32>
    %15 = tpu.concatenate %13, %14 in 1 : vector<6x16xf32>, vector<6x240xf32> -> vector<6x256xf32>
    %c1 = arith.constant 1 : index
    %c0_10 = arith.constant 0 : index
    %c0_11 = arith.constant 0 : index
    %16 = vector.load %arg3[%c1, %c0_10, %c0_11] : memref<9x1x256xf32, #tpu.memory_space<vmem>>, vector<1x1x256xf32>
    %17 = vector.shape_cast %16 : vector<1x1x256xf32> to vector<1x256xf32>
    %18 = vector.broadcast %17 : vector<1x256xf32> to vector<6x256xf32>
    %19 = arith.mulf %15, %18 : vector<6x256xf32>
    %c1_12 = arith.constant 1 : index
    %c0_13 = arith.constant 0 : index
    %c0_14 = arith.constant 0 : index
    %20 = vector.load %arg1[%c1_12, %c0_13, %c0_14] : memref<9x64x6xf32, #tpu.memory_space<vmem>>, vector<1x64x6xf32>
    %21 = vector.shape_cast %20 : vector<1x64x6xf32> to vector<64x6xf32>
    %cst_15 = arith.constant dense<0.000000e+00> : vector<64x256xf32>
    %22 = tpu.matmul %21, %19, %cst_15 {dimension_numbers = #tpu.dot_dimension_numbers<[1], [0], [0], [1], [0, 0, 1, 1], [], []>} : vector<64x6xf32>, vector<6x256xf32>, vector<64x256xf32> -> vector<64x256xf32>
    %23 = arith.addf %12, %22 : vector<64x256xf32>
    %cst_16 = arith.constant 0.000000e+00 : f32
    %24 = vector.broadcast %cst_16 : f32 to vector<6x15xf32>
    %25 = vector.extract_strided_slice %0 {offsets = [0, 0], sizes = [6, 241], strides = [1, 1]} : vector<6x256xf32> to vector<6x241xf32>
    %26 = tpu.concatenate %24, %25 in 1 : vector<6x15xf32>, vector<6x241xf32> -> vector<6x256xf32>
    %c2 = arith.constant 2 : index
    %c0_17 = arith.constant 0 : index
    %c0_18 = arith.constant 0 : index
    %27 = vector.load %arg3[%c2, %c0_17, %c0_18] : memref<9x1x256xf32, #tpu.memory_space<vmem>>, vector<1x1x256xf32>
    %28 = vector.shape_cast %27 : vector<1x1x256xf32> to vector<1x256xf32>
    %29 = vector.broadcast %28 : vector<1x256xf32> to vector<6x256xf32>
    %30 = arith.mulf %26, %29 : vector<6x256xf32>
    %c2_19 = arith.constant 2 : index
    %c0_20 = arith.constant 0 : index
    %c0_21 = arith.constant 0 : index
    %31 = vector.load %arg1[%c2_19, %c0_20, %c0_21] : memref<9x64x6xf32, #tpu.memory_space<vmem>>, vector<1x64x6xf32>
    %32 = vector.shape_cast %31 : vector<1x64x6xf32> to vector<64x6xf32>
    %cst_22 = arith.constant dense<0.000000e+00> : vector<64x256xf32>
    %33 = tpu.matmul %32, %30, %cst_22 {dimension_numbers = #tpu.dot_dimension_numbers<[1], [0], [0], [1], [0, 0, 1, 1], [], []>} : vector<64x6xf32>, vector<6x256xf32>, vector<64x256xf32> -> vector<64x256xf32>
    %34 = arith.addf %23, %33 : vector<64x256xf32>
    %cst_23 = arith.constant 0.000000e+00 : f32
    %35 = vector.broadcast %cst_23 : f32 to vector<6x1xf32>
    %36 = vector.extract_strided_slice %0 {offsets = [0, 0], sizes = [6, 255], strides = [1, 1]} : vector<6x256xf32> to vector<6x255xf32>
    %37 = tpu.concatenate %35, %36 in 1 : vector<6x1xf32>, vector<6x255xf32> -> vector<6x256xf32>
    %c3 = arith.constant 3 : index
    %c0_24 = arith.constant 0 : index
    %c0_25 = arith.constant 0 : index
    %38 = vector.load %arg3[%c3, %c0_24, %c0_25] : memref<9x1x256xf32, #tpu.memory_space<vmem>>, vector<1x1x256xf32>
    %39 = vector.shape_cast %38 : vector<1x1x256xf32> to vector<1x256xf32>
    %40 = vector.broadcast %39 : vector<1x256xf32> to vector<6x256xf32>
    %41 = arith.mulf %37, %40 : vector<6x256xf32>
    %c3_26 = arith.constant 3 : index
    %c0_27 = arith.constant 0 : index
    %c0_28 = arith.constant 0 : index
    %42 = vector.load %arg1[%c3_26, %c0_27, %c0_28] : memref<9x64x6xf32, #tpu.memory_space<vmem>>, vector<1x64x6xf32>
    %43 = vector.shape_cast %42 : vector<1x64x6xf32> to vector<64x6xf32>
    %cst_29 = arith.constant dense<0.000000e+00> : vector<64x256xf32>
    %44 = tpu.matmul %43, %41, %cst_29 {dimension_numbers = #tpu.dot_dimension_numbers<[1], [0], [0], [1], [0, 0, 1, 1], [], []>} : vector<64x6xf32>, vector<6x256xf32>, vector<64x256xf32> -> vector<64x256xf32>
    %45 = arith.addf %34, %44 : vector<64x256xf32>
    %c4 = arith.constant 4 : index
    %c0_30 = arith.constant 0 : index
    %c0_31 = arith.constant 0 : index
    %46 = vector.load %arg3[%c4, %c0_30, %c0_31] : memref<9x1x256xf32, #tpu.memory_space<vmem>>, vector<1x1x256xf32>
    %47 = vector.shape_cast %46 : vector<1x1x256xf32> to vector<1x256xf32>
    %48 = vector.broadcast %47 : vector<1x256xf32> to vector<6x256xf32>
    %49 = arith.mulf %0, %48 : vector<6x256xf32>
    %c4_32 = arith.constant 4 : index
    %c0_33 = arith.constant 0 : index
    %c0_34 = arith.constant 0 : index
    %50 = vector.load %arg1[%c4_32, %c0_33, %c0_34] : memref<9x64x6xf32, #tpu.memory_space<vmem>>, vector<1x64x6xf32>
    %51 = vector.shape_cast %50 : vector<1x64x6xf32> to vector<64x6xf32>
    %cst_35 = arith.constant dense<0.000000e+00> : vector<64x256xf32>
    %52 = tpu.matmul %51, %49, %cst_35 {dimension_numbers = #tpu.dot_dimension_numbers<[1], [0], [0], [1], [0, 0, 1, 1], [], []>} : vector<64x6xf32>, vector<6x256xf32>, vector<64x256xf32> -> vector<64x256xf32>
    %53 = arith.addf %45, %52 : vector<64x256xf32>
    %54 = vector.extract_strided_slice %0 {offsets = [0, 1], sizes = [6, 255], strides = [1, 1]} : vector<6x256xf32> to vector<6x255xf32>
    %cst_36 = arith.constant 0.000000e+00 : f32
    %55 = vector.broadcast %cst_36 : f32 to vector<6x1xf32>
    %56 = tpu.concatenate %54, %55 in 1 : vector<6x255xf32>, vector<6x1xf32> -> vector<6x256xf32>
    %c5 = arith.constant 5 : index
    %c0_37 = arith.constant 0 : index
    %c0_38 = arith.constant 0 : index
    %57 = vector.load %arg3[%c5, %c0_37, %c0_38] : memref<9x1x256xf32, #tpu.memory_space<vmem>>, vector<1x1x256xf32>
    %58 = vector.shape_cast %57 : vector<1x1x256xf32> to vector<1x256xf32>
    %59 = vector.broadcast %58 : vector<1x256xf32> to vector<6x256xf32>
    %60 = arith.mulf %56, %59 : vector<6x256xf32>
    %c5_39 = arith.constant 5 : index
    %c0_40 = arith.constant 0 : index
    %c0_41 = arith.constant 0 : index
    %61 = vector.load %arg1[%c5_39, %c0_40, %c0_41] : memref<9x64x6xf32, #tpu.memory_space<vmem>>, vector<1x64x6xf32>
    %62 = vector.shape_cast %61 : vector<1x64x6xf32> to vector<64x6xf32>
    %cst_42 = arith.constant dense<0.000000e+00> : vector<64x256xf32>
    %63 = tpu.matmul %62, %60, %cst_42 {dimension_numbers = #tpu.dot_dimension_numbers<[1], [0], [0], [1], [0, 0, 1, 1], [], []>} : vector<64x6xf32>, vector<6x256xf32>, vector<64x256xf32> -> vector<64x256xf32>
    %64 = arith.addf %53, %63 : vector<64x256xf32>
    %65 = vector.extract_strided_slice %0 {offsets = [0, 15], sizes = [6, 241], strides = [1, 1]} : vector<6x256xf32> to vector<6x241xf32>
    %cst_43 = arith.constant 0.000000e+00 : f32
    %66 = vector.broadcast %cst_43 : f32 to vector<6x15xf32>
    %67 = tpu.concatenate %65, %66 in 1 : vector<6x241xf32>, vector<6x15xf32> -> vector<6x256xf32>
    %c6 = arith.constant 6 : index
    %c0_44 = arith.constant 0 : index
    %c0_45 = arith.constant 0 : index
    %68 = vector.load %arg3[%c6, %c0_44, %c0_45] : memref<9x1x256xf32, #tpu.memory_space<vmem>>, vector<1x1x256xf32>
    %69 = vector.shape_cast %68 : vector<1x1x256xf32> to vector<1x256xf32>
    %70 = vector.broadcast %69 : vector<1x256xf32> to vector<6x256xf32>
    %71 = arith.mulf %67, %70 : vector<6x256xf32>
    %c6_46 = arith.constant 6 : index
    %c0_47 = arith.constant 0 : index
    %c0_48 = arith.constant 0 : index
    %72 = vector.load %arg1[%c6_46, %c0_47, %c0_48] : memref<9x64x6xf32, #tpu.memory_space<vmem>>, vector<1x64x6xf32>
    %73 = vector.shape_cast %72 : vector<1x64x6xf32> to vector<64x6xf32>
    %cst_49 = arith.constant dense<0.000000e+00> : vector<64x256xf32>
    %74 = tpu.matmul %73, %71, %cst_49 {dimension_numbers = #tpu.dot_dimension_numbers<[1], [0], [0], [1], [0, 0, 1, 1], [], []>} : vector<64x6xf32>, vector<6x256xf32>, vector<64x256xf32> -> vector<64x256xf32>
    %75 = arith.addf %64, %74 : vector<64x256xf32>
    %76 = vector.extract_strided_slice %0 {offsets = [0, 16], sizes = [6, 240], strides = [1, 1]} : vector<6x256xf32> to vector<6x240xf32>
    %cst_50 = arith.constant 0.000000e+00 : f32
    %77 = vector.broadcast %cst_50 : f32 to vector<6x16xf32>
    %78 = tpu.concatenate %76, %77 in 1 : vector<6x240xf32>, vector<6x16xf32> -> vector<6x256xf32>
    %c7 = arith.constant 7 : index
    %c0_51 = arith.constant 0 : index
    %c0_52 = arith.constant 0 : index
    %79 = vector.load %arg3[%c7, %c0_51, %c0_52] : memref<9x1x256xf32, #tpu.memory_space<vmem>>, vector<1x1x256xf32>
    %80 = vector.shape_cast %79 : vector<1x1x256xf32> to vector<1x256xf32>
    %81 = vector.broadcast %80 : vector<1x256xf32> to vector<6x256xf32>
    %82 = arith.mulf %78, %81 : vector<6x256xf32>
    %c7_53 = arith.constant 7 : index
    %c0_54 = arith.constant 0 : index
    %c0_55 = arith.constant 0 : index
    %83 = vector.load %arg1[%c7_53, %c0_54, %c0_55] : memref<9x64x6xf32, #tpu.memory_space<vmem>>, vector<1x64x6xf32>
    %84 = vector.shape_cast %83 : vector<1x64x6xf32> to vector<64x6xf32>
    %cst_56 = arith.constant dense<0.000000e+00> : vector<64x256xf32>
    %85 = tpu.matmul %84, %82, %cst_56 {dimension_numbers = #tpu.dot_dimension_numbers<[1], [0], [0], [1], [0, 0, 1, 1], [], []>} : vector<64x6xf32>, vector<6x256xf32>, vector<64x256xf32> -> vector<64x256xf32>
    %86 = arith.addf %75, %85 : vector<64x256xf32>
    %87 = vector.extract_strided_slice %0 {offsets = [0, 17], sizes = [6, 239], strides = [1, 1]} : vector<6x256xf32> to vector<6x239xf32>
    %cst_57 = arith.constant 0.000000e+00 : f32
    %88 = vector.broadcast %cst_57 : f32 to vector<6x17xf32>
    %89 = tpu.concatenate %87, %88 in 1 : vector<6x239xf32>, vector<6x17xf32> -> vector<6x256xf32>
    %c8 = arith.constant 8 : index
    %c0_58 = arith.constant 0 : index
    %c0_59 = arith.constant 0 : index
    %90 = vector.load %arg3[%c8, %c0_58, %c0_59] : memref<9x1x256xf32, #tpu.memory_space<vmem>>, vector<1x1x256xf32>
    %91 = vector.shape_cast %90 : vector<1x1x256xf32> to vector<1x256xf32>
    %92 = vector.broadcast %91 : vector<1x256xf32> to vector<6x256xf32>
    %93 = arith.mulf %89, %92 : vector<6x256xf32>
    %c8_60 = arith.constant 8 : index
    %c0_61 = arith.constant 0 : index
    %c0_62 = arith.constant 0 : index
    %94 = vector.load %arg1[%c8_60, %c0_61, %c0_62] : memref<9x64x6xf32, #tpu.memory_space<vmem>>, vector<1x64x6xf32>
    %95 = vector.shape_cast %94 : vector<1x64x6xf32> to vector<64x6xf32>
    %cst_63 = arith.constant dense<0.000000e+00> : vector<64x256xf32>
    %96 = tpu.matmul %95, %93, %cst_63 {dimension_numbers = #tpu.dot_dimension_numbers<[1], [0], [0], [1], [0, 0, 1, 1], [], []>} : vector<64x6xf32>, vector<6x256xf32>, vector<64x256xf32> -> vector<64x256xf32>
    %97 = arith.addf %86, %96 : vector<64x256xf32>
    %c0_64 = arith.constant 0 : index
    %c0_65 = arith.constant 0 : index
    %98 = vector.load %arg4[%c0_64, %c0_65] : memref<32x1xf32, #tpu.memory_space<vmem>>, vector<32x1xf32>
    %c0_66 = arith.constant 0 : index
    %c0_67 = arith.constant 0 : index
    %99 = vector.load %arg5[%c0_66, %c0_67] : memref<32x1xf32, #tpu.memory_space<vmem>>, vector<32x1xf32>
    %cst_68 = arith.constant 1.000000e+00 : f32
    %100 = vector.broadcast %cst_68 : f32 to vector<256x1xf32>
    %cst_69 = arith.constant dense<0.000000e+00> : vector<64x1xf32>
    %101 = tpu.matmul %97, %100, %cst_69 {dimension_numbers = #tpu.dot_dimension_numbers<[1], [0], [0], [1], [0, 0, 1, 1], [], []>} : vector<64x256xf32>, vector<256x1xf32>, vector<64x1xf32> -> vector<64x1xf32>
    %102 = vector.extract_strided_slice %101 {offsets = [0, 0], sizes = [32, 1], strides = [1, 1]} : vector<64x1xf32> to vector<32x1xf32>
    %103 = vector.extract_strided_slice %101 {offsets = [32, 0], sizes = [32, 1], strides = [1, 1]} : vector<64x1xf32> to vector<32x1xf32>
    %104 = arith.addf %102, %103 : vector<32x1xf32>
    %cst_70 = arith.constant 0.001953125 : f32
    %105 = vector.broadcast %cst_70 : f32 to vector<32x1xf32>
    %106 = arith.mulf %104, %105 : vector<32x1xf32>
    %107 = tpu.concatenate %106, %106 in 0 : vector<32x1xf32>, vector<32x1xf32> -> vector<64x1xf32>
    %108 = vector.broadcast %107 : vector<64x1xf32> to vector<64x256xf32>
    %109 = arith.subf %97, %108 : vector<64x256xf32>
    %110 = arith.mulf %109, %109 : vector<64x256xf32>
    %cst_71 = arith.constant dense<0.000000e+00> : vector<64x1xf32>
    %111 = tpu.matmul %110, %100, %cst_71 {dimension_numbers = #tpu.dot_dimension_numbers<[1], [0], [0], [1], [0, 0, 1, 1], [], []>} : vector<64x256xf32>, vector<256x1xf32>, vector<64x1xf32> -> vector<64x1xf32>
    %112 = vector.extract_strided_slice %111 {offsets = [0, 0], sizes = [32, 1], strides = [1, 1]} : vector<64x1xf32> to vector<32x1xf32>
    %113 = vector.extract_strided_slice %111 {offsets = [32, 0], sizes = [32, 1], strides = [1, 1]} : vector<64x1xf32> to vector<32x1xf32>
    %114 = arith.addf %112, %113 : vector<32x1xf32>
    %cst_72 = arith.constant 0.001953125 : f32
    %115 = vector.broadcast %cst_72 : f32 to vector<32x1xf32>
    %116 = arith.mulf %114, %115 : vector<32x1xf32>
    %cst_73 = arith.constant 9.99999974E-6 : f32
    %117 = vector.broadcast %cst_73 : f32 to vector<32x1xf32>
    %118 = arith.addf %116, %117 : vector<32x1xf32>
    %119 = math.rsqrt %118 : vector<32x1xf32>
    %120 = arith.mulf %98, %119 : vector<32x1xf32>
    %121 = tpu.concatenate %120, %120 in 0 : vector<32x1xf32>, vector<32x1xf32> -> vector<64x1xf32>
    %122 = vector.broadcast %121 : vector<64x1xf32> to vector<64x256xf32>
    %123 = arith.mulf %109, %122 : vector<64x256xf32>
    %124 = tpu.concatenate %99, %99 in 0 : vector<32x1xf32>, vector<32x1xf32> -> vector<64x1xf32>
    %125 = vector.broadcast %124 : vector<64x1xf32> to vector<64x256xf32>
    %126 = arith.addf %123, %125 : vector<64x256xf32>
    %cst_74 = arith.constant 0.000000e+00 : f32
    %127 = vector.broadcast %cst_74 : f32 to vector<64x256xf32>
    %128 = arith.maximumf %126, %127 : vector<64x256xf32>
    %cst_75 = arith.constant 0.000000e+00 : f32
    %129 = vector.broadcast %cst_75 : f32 to vector<6x256xf32>
    %c0_76 = arith.constant 0 : index
    %c0_77 = arith.constant 0 : index
    %c0_78 = arith.constant 0 : index
    %130 = vector.load %arg2[%c0_76, %c0_77, %c0_78] : memref<9x6x64xf32, #tpu.memory_space<vmem>>, vector<1x6x64xf32>
    %131 = vector.shape_cast %130 : vector<1x6x64xf32> to vector<6x64xf32>
    %cst_79 = arith.constant dense<0.000000e+00> : vector<6x256xf32>
    %132 = tpu.matmul %131, %128, %cst_79 {dimension_numbers = #tpu.dot_dimension_numbers<[1], [0], [0], [1], [0, 0, 1, 1], [], []>} : vector<6x64xf32>, vector<64x256xf32>, vector<6x256xf32> -> vector<6x256xf32>
    %cst_80 = arith.constant 0.000000e+00 : f32
    %133 = vector.broadcast %cst_80 : f32 to vector<6x17xf32>
    %134 = vector.extract_strided_slice %132 {offsets = [0, 0], sizes = [6, 239], strides = [1, 1]} : vector<6x256xf32> to vector<6x239xf32>
    %135 = tpu.concatenate %133, %134 in 1 : vector<6x17xf32>, vector<6x239xf32> -> vector<6x256xf32>
    %c0_81 = arith.constant 0 : index
    %c0_82 = arith.constant 0 : index
    %c0_83 = arith.constant 0 : index
    %136 = vector.load %arg3[%c0_81, %c0_82, %c0_83] : memref<9x1x256xf32, #tpu.memory_space<vmem>>, vector<1x1x256xf32>
    %137 = vector.shape_cast %136 : vector<1x1x256xf32> to vector<1x256xf32>
    %138 = vector.broadcast %137 : vector<1x256xf32> to vector<6x256xf32>
    %139 = arith.mulf %135, %138 : vector<6x256xf32>
    %140 = arith.addf %129, %139 : vector<6x256xf32>
    %c1_84 = arith.constant 1 : index
    %c0_85 = arith.constant 0 : index
    %c0_86 = arith.constant 0 : index
    %141 = vector.load %arg2[%c1_84, %c0_85, %c0_86] : memref<9x6x64xf32, #tpu.memory_space<vmem>>, vector<1x6x64xf32>
    %142 = vector.shape_cast %141 : vector<1x6x64xf32> to vector<6x64xf32>
    %cst_87 = arith.constant dense<0.000000e+00> : vector<6x256xf32>
    %143 = tpu.matmul %142, %128, %cst_87 {dimension_numbers = #tpu.dot_dimension_numbers<[1], [0], [0], [1], [0, 0, 1, 1], [], []>} : vector<6x64xf32>, vector<64x256xf32>, vector<6x256xf32> -> vector<6x256xf32>
    %cst_88 = arith.constant 0.000000e+00 : f32
    %144 = vector.broadcast %cst_88 : f32 to vector<6x16xf32>
    %145 = vector.extract_strided_slice %143 {offsets = [0, 0], sizes = [6, 240], strides = [1, 1]} : vector<6x256xf32> to vector<6x240xf32>
    %146 = tpu.concatenate %144, %145 in 1 : vector<6x16xf32>, vector<6x240xf32> -> vector<6x256xf32>
    %c1_89 = arith.constant 1 : index
    %c0_90 = arith.constant 0 : index
    %c0_91 = arith.constant 0 : index
    %147 = vector.load %arg3[%c1_89, %c0_90, %c0_91] : memref<9x1x256xf32, #tpu.memory_space<vmem>>, vector<1x1x256xf32>
    %148 = vector.shape_cast %147 : vector<1x1x256xf32> to vector<1x256xf32>
    %149 = vector.broadcast %148 : vector<1x256xf32> to vector<6x256xf32>
    %150 = arith.mulf %146, %149 : vector<6x256xf32>
    %151 = arith.addf %140, %150 : vector<6x256xf32>
    %c2_92 = arith.constant 2 : index
    %c0_93 = arith.constant 0 : index
    %c0_94 = arith.constant 0 : index
    %152 = vector.load %arg2[%c2_92, %c0_93, %c0_94] : memref<9x6x64xf32, #tpu.memory_space<vmem>>, vector<1x6x64xf32>
    %153 = vector.shape_cast %152 : vector<1x6x64xf32> to vector<6x64xf32>
    %cst_95 = arith.constant dense<0.000000e+00> : vector<6x256xf32>
    %154 = tpu.matmul %153, %128, %cst_95 {dimension_numbers = #tpu.dot_dimension_numbers<[1], [0], [0], [1], [0, 0, 1, 1], [], []>} : vector<6x64xf32>, vector<64x256xf32>, vector<6x256xf32> -> vector<6x256xf32>
    %cst_96 = arith.constant 0.000000e+00 : f32
    %155 = vector.broadcast %cst_96 : f32 to vector<6x15xf32>
    %156 = vector.extract_strided_slice %154 {offsets = [0, 0], sizes = [6, 241], strides = [1, 1]} : vector<6x256xf32> to vector<6x241xf32>
    %157 = tpu.concatenate %155, %156 in 1 : vector<6x15xf32>, vector<6x241xf32> -> vector<6x256xf32>
    %c2_97 = arith.constant 2 : index
    %c0_98 = arith.constant 0 : index
    %c0_99 = arith.constant 0 : index
    %158 = vector.load %arg3[%c2_97, %c0_98, %c0_99] : memref<9x1x256xf32, #tpu.memory_space<vmem>>, vector<1x1x256xf32>
    %159 = vector.shape_cast %158 : vector<1x1x256xf32> to vector<1x256xf32>
    %160 = vector.broadcast %159 : vector<1x256xf32> to vector<6x256xf32>
    %161 = arith.mulf %157, %160 : vector<6x256xf32>
    %162 = arith.addf %151, %161 : vector<6x256xf32>
    %c3_100 = arith.constant 3 : index
    %c0_101 = arith.constant 0 : index
    %c0_102 = arith.constant 0 : index
    %163 = vector.load %arg2[%c3_100, %c0_101, %c0_102] : memref<9x6x64xf32, #tpu.memory_space<vmem>>, vector<1x6x64xf32>
    %164 = vector.shape_cast %163 : vector<1x6x64xf32> to vector<6x64xf32>
    %cst_103 = arith.constant dense<0.000000e+00> : vector<6x256xf32>
    %165 = tpu.matmul %164, %128, %cst_103 {dimension_numbers = #tpu.dot_dimension_numbers<[1], [0], [0], [1], [0, 0, 1, 1], [], []>} : vector<6x64xf32>, vector<64x256xf32>, vector<6x256xf32> -> vector<6x256xf32>
    %cst_104 = arith.constant 0.000000e+00 : f32
    %166 = vector.broadcast %cst_104 : f32 to vector<6x1xf32>
    %167 = vector.extract_strided_slice %165 {offsets = [0, 0], sizes = [6, 255], strides = [1, 1]} : vector<6x256xf32> to vector<6x255xf32>
    %168 = tpu.concatenate %166, %167 in 1 : vector<6x1xf32>, vector<6x255xf32> -> vector<6x256xf32>
    %c3_105 = arith.constant 3 : index
    %c0_106 = arith.constant 0 : index
    %c0_107 = arith.constant 0 : index
    %169 = vector.load %arg3[%c3_105, %c0_106, %c0_107] : memref<9x1x256xf32, #tpu.memory_space<vmem>>, vector<1x1x256xf32>
    %170 = vector.shape_cast %169 : vector<1x1x256xf32> to vector<1x256xf32>
    %171 = vector.broadcast %170 : vector<1x256xf32> to vector<6x256xf32>
    %172 = arith.mulf %168, %171 : vector<6x256xf32>
    %173 = arith.addf %162, %172 : vector<6x256xf32>
    %c4_108 = arith.constant 4 : index
    %c0_109 = arith.constant 0 : index
    %c0_110 = arith.constant 0 : index
    %174 = vector.load %arg2[%c4_108, %c0_109, %c0_110] : memref<9x6x64xf32, #tpu.memory_space<vmem>>, vector<1x6x64xf32>
    %175 = vector.shape_cast %174 : vector<1x6x64xf32> to vector<6x64xf32>
    %cst_111 = arith.constant dense<0.000000e+00> : vector<6x256xf32>
    %176 = tpu.matmul %175, %128, %cst_111 {dimension_numbers = #tpu.dot_dimension_numbers<[1], [0], [0], [1], [0, 0, 1, 1], [], []>} : vector<6x64xf32>, vector<64x256xf32>, vector<6x256xf32> -> vector<6x256xf32>
    %c4_112 = arith.constant 4 : index
    %c0_113 = arith.constant 0 : index
    %c0_114 = arith.constant 0 : index
    %177 = vector.load %arg3[%c4_112, %c0_113, %c0_114] : memref<9x1x256xf32, #tpu.memory_space<vmem>>, vector<1x1x256xf32>
    %178 = vector.shape_cast %177 : vector<1x1x256xf32> to vector<1x256xf32>
    %179 = vector.broadcast %178 : vector<1x256xf32> to vector<6x256xf32>
    %180 = arith.mulf %176, %179 : vector<6x256xf32>
    %181 = arith.addf %173, %180 : vector<6x256xf32>
    %c5_115 = arith.constant 5 : index
    %c0_116 = arith.constant 0 : index
    %c0_117 = arith.constant 0 : index
    %182 = vector.load %arg2[%c5_115, %c0_116, %c0_117] : memref<9x6x64xf32, #tpu.memory_space<vmem>>, vector<1x6x64xf32>
    %183 = vector.shape_cast %182 : vector<1x6x64xf32> to vector<6x64xf32>
    %cst_118 = arith.constant dense<0.000000e+00> : vector<6x256xf32>
    %184 = tpu.matmul %183, %128, %cst_118 {dimension_numbers = #tpu.dot_dimension_numbers<[1], [0], [0], [1], [0, 0, 1, 1], [], []>} : vector<6x64xf32>, vector<64x256xf32>, vector<6x256xf32> -> vector<6x256xf32>
    %185 = vector.extract_strided_slice %184 {offsets = [0, 1], sizes = [6, 255], strides = [1, 1]} : vector<6x256xf32> to vector<6x255xf32>
    %cst_119 = arith.constant 0.000000e+00 : f32
    %186 = vector.broadcast %cst_119 : f32 to vector<6x1xf32>
    %187 = tpu.concatenate %185, %186 in 1 : vector<6x255xf32>, vector<6x1xf32> -> vector<6x256xf32>
    %c5_120 = arith.constant 5 : index
    %c0_121 = arith.constant 0 : index
    %c0_122 = arith.constant 0 : index
    %188 = vector.load %arg3[%c5_120, %c0_121, %c0_122] : memref<9x1x256xf32, #tpu.memory_space<vmem>>, vector<1x1x256xf32>
    %189 = vector.shape_cast %188 : vector<1x1x256xf32> to vector<1x256xf32>
    %190 = vector.broadcast %189 : vector<1x256xf32> to vector<6x256xf32>
    %191 = arith.mulf %187, %190 : vector<6x256xf32>
    %192 = arith.addf %181, %191 : vector<6x256xf32>
    %c6_123 = arith.constant 6 : index
    %c0_124 = arith.constant 0 : index
    %c0_125 = arith.constant 0 : index
    %193 = vector.load %arg2[%c6_123, %c0_124, %c0_125] : memref<9x6x64xf32, #tpu.memory_space<vmem>>, vector<1x6x64xf32>
    %194 = vector.shape_cast %193 : vector<1x6x64xf32> to vector<6x64xf32>
    %cst_126 = arith.constant dense<0.000000e+00> : vector<6x256xf32>
    %195 = tpu.matmul %194, %128, %cst_126 {dimension_numbers = #tpu.dot_dimension_numbers<[1], [0], [0], [1], [0, 0, 1, 1], [], []>} : vector<6x64xf32>, vector<64x256xf32>, vector<6x256xf32> -> vector<6x256xf32>
    %196 = vector.extract_strided_slice %195 {offsets = [0, 15], sizes = [6, 241], strides = [1, 1]} : vector<6x256xf32> to vector<6x241xf32>
    %cst_127 = arith.constant 0.000000e+00 : f32
    %197 = vector.broadcast %cst_127 : f32 to vector<6x15xf32>
    %198 = tpu.concatenate %196, %197 in 1 : vector<6x241xf32>, vector<6x15xf32> -> vector<6x256xf32>
    %c6_128 = arith.constant 6 : index
    %c0_129 = arith.constant 0 : index
    %c0_130 = arith.constant 0 : index
    %199 = vector.load %arg3[%c6_128, %c0_129, %c0_130] : memref<9x1x256xf32, #tpu.memory_space<vmem>>, vector<1x1x256xf32>
    %200 = vector.shape_cast %199 : vector<1x1x256xf32> to vector<1x256xf32>
    %201 = vector.broadcast %200 : vector<1x256xf32> to vector<6x256xf32>
    %202 = arith.mulf %198, %201 : vector<6x256xf32>
    %203 = arith.addf %192, %202 : vector<6x256xf32>
    %c7_131 = arith.constant 7 : index
    %c0_132 = arith.constant 0 : index
    %c0_133 = arith.constant 0 : index
    %204 = vector.load %arg2[%c7_131, %c0_132, %c0_133] : memref<9x6x64xf32, #tpu.memory_space<vmem>>, vector<1x6x64xf32>
    %205 = vector.shape_cast %204 : vector<1x6x64xf32> to vector<6x64xf32>
    %cst_134 = arith.constant dense<0.000000e+00> : vector<6x256xf32>
    %206 = tpu.matmul %205, %128, %cst_134 {dimension_numbers = #tpu.dot_dimension_numbers<[1], [0], [0], [1], [0, 0, 1, 1], [], []>} : vector<6x64xf32>, vector<64x256xf32>, vector<6x256xf32> -> vector<6x256xf32>
    %207 = vector.extract_strided_slice %206 {offsets = [0, 16], sizes = [6, 240], strides = [1, 1]} : vector<6x256xf32> to vector<6x240xf32>
    %cst_135 = arith.constant 0.000000e+00 : f32
    %208 = vector.broadcast %cst_135 : f32 to vector<6x16xf32>
    %209 = tpu.concatenate %207, %208 in 1 : vector<6x240xf32>, vector<6x16xf32> -> vector<6x256xf32>
    %c7_136 = arith.constant 7 : index
    %c0_137 = arith.constant 0 : index
    %c0_138 = arith.constant 0 : index
    %210 = vector.load %arg3[%c7_136, %c0_137, %c0_138] : memref<9x1x256xf32, #tpu.memory_space<vmem>>, vector<1x1x256xf32>
    %211 = vector.shape_cast %210 : vector<1x1x256xf32> to vector<1x256xf32>
    %212 = vector.broadcast %211 : vector<1x256xf32> to vector<6x256xf32>
    %213 = arith.mulf %209, %212 : vector<6x256xf32>
    %214 = arith.addf %203, %213 : vector<6x256xf32>
    %c8_139 = arith.constant 8 : index
    %c0_140 = arith.constant 0 : index
    %c0_141 = arith.constant 0 : index
    %215 = vector.load %arg2[%c8_139, %c0_140, %c0_141] : memref<9x6x64xf32, #tpu.memory_space<vmem>>, vector<1x6x64xf32>
    %216 = vector.shape_cast %215 : vector<1x6x64xf32> to vector<6x64xf32>
    %cst_142 = arith.constant dense<0.000000e+00> : vector<6x256xf32>
    %217 = tpu.matmul %216, %128, %cst_142 {dimension_numbers = #tpu.dot_dimension_numbers<[1], [0], [0], [1], [0, 0, 1, 1], [], []>} : vector<6x64xf32>, vector<64x256xf32>, vector<6x256xf32> -> vector<6x256xf32>
    %218 = vector.extract_strided_slice %217 {offsets = [0, 17], sizes = [6, 239], strides = [1, 1]} : vector<6x256xf32> to vector<6x239xf32>
    %cst_143 = arith.constant 0.000000e+00 : f32
    %219 = vector.broadcast %cst_143 : f32 to vector<6x17xf32>
    %220 = tpu.concatenate %218, %219 in 1 : vector<6x239xf32>, vector<6x17xf32> -> vector<6x256xf32>
    %c8_144 = arith.constant 8 : index
    %c0_145 = arith.constant 0 : index
    %c0_146 = arith.constant 0 : index
    %221 = vector.load %arg3[%c8_144, %c0_145, %c0_146] : memref<9x1x256xf32, #tpu.memory_space<vmem>>, vector<1x1x256xf32>
    %222 = vector.shape_cast %221 : vector<1x1x256xf32> to vector<1x256xf32>
    %223 = vector.broadcast %222 : vector<1x256xf32> to vector<6x256xf32>
    %224 = arith.mulf %220, %223 : vector<6x256xf32>
    %225 = arith.addf %214, %224 : vector<6x256xf32>
    %c0_147 = arith.constant 0 : index
    %c0_148 = arith.constant 0 : index
    %226 = vector.load %arg6[%c0_147, %c0_148] : memref<3x1xf32, #tpu.memory_space<vmem>>, vector<3x1xf32>
    %c0_149 = arith.constant 0 : index
    %c0_150 = arith.constant 0 : index
    %227 = vector.load %arg7[%c0_149, %c0_150] : memref<3x1xf32, #tpu.memory_space<vmem>>, vector<3x1xf32>
    %cst_151 = arith.constant 1.000000e+00 : f32
    %228 = vector.broadcast %cst_151 : f32 to vector<256x1xf32>
    %cst_152 = arith.constant dense<0.000000e+00> : vector<6x1xf32>
    %229 = tpu.matmul %225, %228, %cst_152 {dimension_numbers = #tpu.dot_dimension_numbers<[1], [0], [0], [1], [0, 0, 1, 1], [], []>} : vector<6x256xf32>, vector<256x1xf32>, vector<6x1xf32> -> vector<6x1xf32>
    %230 = vector.extract_strided_slice %229 {offsets = [0, 0], sizes = [3, 1], strides = [1, 1]} : vector<6x1xf32> to vector<3x1xf32>
    %231 = vector.extract_strided_slice %229 {offsets = [3, 0], sizes = [3, 1], strides = [1, 1]} : vector<6x1xf32> to vector<3x1xf32>
    %232 = arith.addf %230, %231 : vector<3x1xf32>
    %cst_153 = arith.constant 0.001953125 : f32
    %233 = vector.broadcast %cst_153 : f32 to vector<3x1xf32>
    %234 = arith.mulf %232, %233 : vector<3x1xf32>
    %235 = tpu.concatenate %234, %234 in 0 : vector<3x1xf32>, vector<3x1xf32> -> vector<6x1xf32>
    %236 = vector.broadcast %235 : vector<6x1xf32> to vector<6x256xf32>
    %237 = arith.subf %225, %236 : vector<6x256xf32>
    %238 = arith.mulf %237, %237 : vector<6x256xf32>
    %cst_154 = arith.constant dense<0.000000e+00> : vector<6x1xf32>
    %239 = tpu.matmul %238, %228, %cst_154 {dimension_numbers = #tpu.dot_dimension_numbers<[1], [0], [0], [1], [0, 0, 1, 1], [], []>} : vector<6x256xf32>, vector<256x1xf32>, vector<6x1xf32> -> vector<6x1xf32>
    %240 = vector.extract_strided_slice %239 {offsets = [0, 0], sizes = [3, 1], strides = [1, 1]} : vector<6x1xf32> to vector<3x1xf32>
    %241 = vector.extract_strided_slice %239 {offsets = [3, 0], sizes = [3, 1], strides = [1, 1]} : vector<6x1xf32> to vector<3x1xf32>
    %242 = arith.addf %240, %241 : vector<3x1xf32>
    %cst_155 = arith.constant 0.001953125 : f32
    %243 = vector.broadcast %cst_155 : f32 to vector<3x1xf32>
    %244 = arith.mulf %242, %243 : vector<3x1xf32>
    %cst_156 = arith.constant 9.99999974E-6 : f32
    %245 = vector.broadcast %cst_156 : f32 to vector<3x1xf32>
    %246 = arith.addf %244, %245 : vector<3x1xf32>
    %247 = math.rsqrt %246 : vector<3x1xf32>
    %248 = arith.mulf %226, %247 : vector<3x1xf32>
    %249 = tpu.concatenate %248, %248 in 0 : vector<3x1xf32>, vector<3x1xf32> -> vector<6x1xf32>
    %250 = vector.broadcast %249 : vector<6x1xf32> to vector<6x256xf32>
    %251 = arith.mulf %237, %250 : vector<6x256xf32>
    %252 = tpu.concatenate %227, %227 in 0 : vector<3x1xf32>, vector<3x1xf32> -> vector<6x1xf32>
    %253 = vector.broadcast %252 : vector<6x1xf32> to vector<6x256xf32>
    %254 = arith.addf %251, %253 : vector<6x256xf32>
    %cst_157 = arith.constant 0.000000e+00 : f32
    %255 = vector.broadcast %cst_157 : f32 to vector<6x256xf32>
    %256 = arith.maximumf %254, %255 : vector<6x256xf32>
    %c0_158 = arith.constant 0 : index
    %c0_159 = arith.constant 0 : index
    %257 = vector.load %arg8[%c0_158, %c0_159] : memref<6x256xf32, #tpu.memory_space<vmem>>, vector<6x256xf32>
    tpu.vector_store %arg8[%c0_158, %c0_159], %256 {strides = array<i32>} : memref<6x256xf32, #tpu.memory_space<vmem>>, vector<6x256xf32>,
    return
  }
}

</mosaic_0001>

<bundles_post_ra>
// kernel: tpu_custom_call.1
= control target key start
LH: loop header
LB: loop body
LE: loop exit
PB: predicated region body
PF: predicated region fallthrough
CT: control target
= control target key end

     0   :  { %s3861_s29 = smov 16   ;;  %s3862_s30 = smov 17   ;;  %v3863_v2 = vmov 0.0   ;;  %s4895_s0 = inlined_call_operand.vmem [shape: f32[6,256], index: 0, kind: input, shape index: {}]   ;;  %s4896_s1 = inlined_call_operand.vmem [shape: f32[9,64,6], index: 1, kind: input, shape index: {}]   ;;  %s4897_s2 = inlined_call_operand.vmem [shape: f32[9,6,64], index: 2, kind: input, shape index: {}]   ;;  %s4898_s3 = inlined_call_operand.vmem [shape: f32[9,1,256], index: 3, kind: input, shape index: {}]   ;;  %s4899_s4 = inlined_call_operand.vmem [shape: f32[32,1], index: 4, kind: input, shape index: {}]   ;;  %s4900_s5 = inlined_call_operand.vmem [shape: f32[32,1], index: 5, kind: input, shape index: {}]   ;;  %s4901_s6 = inlined_call_operand.vmem [shape: f32[3,1], index: 6, kind: input, shape index: {}]   ;;  %s4902_s7 = inlined_call_operand.vmem [shape: f32[3,1], index: 7, kind: input, shape index: {}]   ;;  %s4903_s8 = inlined_call_operand.hbm [shape: f32[6,256], index: 8, kind: output, shape index: {}]  }
   0x1   :  { %v3921_v0 = vld [vmem:[%s4895_s0] sm:$0x3f]  ;;  %v3930_v1 = vld [vmem:[%s4895_s0 + $0x8] sm:$0x3f]  ;;  %194 = vmatprep.mubr.f32.mxu0 %v3863_v2 }
   0x2   :  { %65 = vrot.lane.b32.xlu0 %v3921_v0, %s3861_s29  ;;  %34 = vrot.lane.b32.xlu1 %v3921_v0, %s3862_s30 }
   0x3   :  { %13 = vsyncpa [#allocation3], 0  ;;  %s3864_s11 = smov 15   ;;  %s3865_s12 = smov 1   ;;  %v45_v3 = vlaneseq  ;;  %v43_v7 = vld [vmem:[%s4898_s3] sm:$0x3] }
   0x4   :  { %s3866_s0 = smov 127   ;;  %s3867_s13 = smov 113   ;;  %v3116_v8 = vld [vmem:[%s4898_s3 + $0x2] sm:$0x3]  ;;  %vm69_vm0 = vcmask 130048   ;;  %vm38_vm1 = vcmask 138240  }
   0x5   :  { %s3868_s14 = smov 112   ;;  %v46_v4 = vshrl.u32 %v45_v3, 7  ;;  %s3869_s15 = smov 111   ;;  %v3145_v15 = vld [vmem:[%s4898_s3 + $0x4] sm:$0x3]  ;;  %vm123_vm2 = vcmask 1045504  }
   0x6   :  { %67 = vrot.lane.b32.xlu0 %v3930_v1, %s3861_s29  ;;  %36 = vrot.lane.b32.xlu1 %v3930_v1, %s3862_s30  ;;  %vm390_vm3 = vcmask 121856   ;;  %v3117_v27 = vld [vmem:[%s4896_s1 + $0x40] sm:$0xff]  ;;  %vm98_vm4 = vcmask 48128   ;;  %v3118_v32 = vld [vmem:[%s4896_s1 + $0x48] sm:$0xff]  ;;  %vm582_vm5 = vcmask 7168   ;;  %vm957_vm6 = vcmask 1039360  }
   0x7   :  { %v3961_v5 = vsub.s32 1, %v46_v4  ;;  %v3963_v6 = vsub.s32 0, %v46_v4  ;;  %v3119_v33 = vld [vmem:[%s4896_s1 + $0x50] sm:$0xff]  ;;  %v3120_v34 = vld [vmem:[%s4896_s1 + $0x58] sm:$0xff]  ;;  %v3121_v35 = vld [vmem:[%s4896_s1 + $0x60] sm:$0xff]  ;;  %vm1149_vm7 = vcmask 924672  }
   0x8   :  { %v3122_v36 = vld [vmem:[%s4896_s1 + $0x68] sm:$0xff]  ;;  %v3123_v37 = vld [vmem:[%s4896_s1 + $0x70] sm:$0xff]  ;;  %v3164_v38 = vld [vmem:[%s4898_s3 + $0x6] sm:$0x3]  ;;  %vm1341_vm8 = vcmask 916480   ;;  %vm1533_vm9 = vcmask 908288  }
   0x9   :  { %v3972_v11 = vrot.slane %v3116_v8, %v3961_v5  ;;  %v3975_v12 = vrot.slane %v43_v7, %v3961_v5  ;;  %v3978_v13 = vrot.slane %v3116_v8, %v3963_v6  ;;  %v3981_v14 = vrot.slane %v43_v7, %v3963_v6  ;;  %v3124_v41 = vld [vmem:[%s4896_s1 + $0x78] sm:$0xff]  ;;  %v57_v46 = vld [vmem:[%s4896_s1] sm:$0xff]  ;;  %v58_v49 = vld [vmem:[%s4896_s1 + $0x8] sm:$0xff] }
   0xa   :  { %388 = vrot.lane.b32.xlu1 %v3930_v1, %s3864_s11  ;;  %386 = vrot.lane.b32.xlu0 %v3921_v0, %s3864_s11  ;;  %v3993_v24 = vrot.slane %v3145_v15, %v3961_v5  ;;  %v4046_v42 = vrot.slane %v3145_v15, %v3963_v6  ;;  %v4050_v44 = vrot.slane %v3164_v38, %v3961_v5  ;;  %v59_v50 = vld [vmem:[%s4896_s1 + $0x10] sm:$0xff]  ;;  %v60_v51 = vld [vmem:[%s4896_s1 + $0x18] sm:$0xff]  ;;  %vm2108_vm10 = vcmask 523264  }
   0xb   :  { %v61_v52 = vld [vmem:[%s4896_s1 + $0x20] sm:$0xff]  ;;  %v62_v53 = vld [vmem:[%s4896_s1 + $0x28] sm:$0xff]  ;;  %v63_v54 = vld [vmem:[%s4896_s1 + $0x30] sm:$0xff]  ;;  %v4101_v57 = vrot.slane %v3164_v38, %v3963_v6  ;;  %vm2987_vm11 = vcmask 1042432  }
   0xc   :  { %v3183_v55 = vld [vmem:[%s4898_s3 + $0x8] sm:$0x3]  ;;  %v64_v56 = vld [vmem:[%s4896_s1 + $0x38] sm:$0xff]  ;;  %v3146_v60 = vld [vmem:[%s4896_s1 + $0x80] sm:$0xff] }
   0xd   :  { %v4105_v59 = vrot.slane %v3183_v55, %v3961_v5  ;;  %v3147_v63 = vld [vmem:[%s4896_s1 + $0x88] sm:$0xff]  ;;  %v3149_v3 = vld [vmem:[%s4896_s1 + $0x98] sm:$0xff]  ;;  %v3150_v4 = vld [vmem:[%s4896_s1 + $0xa0] sm:$0xff] }
   0xe   :  { %580 = vrot.lane.b32.xlu1 %v3930_v1, %s3865_s12  ;;  %578 = vrot.lane.b32.xlu0 %v3921_v0, %s3865_s12  ;;  %v3151_v7 = vld [vmem:[%s4896_s1 + $0xa8] sm:$0xff]  ;;  %v3152_v8 = vld [vmem:[%s4896_s1 + $0xb0] sm:$0xff] }
   0xf   :  { %v784_v62 = vmul.f32 %v4105_v59, %v3930_v1  ;;  %v3153_v15 = vld [vmem:[%s4896_s1 + $0xb8] sm:$0xff] }
  0x12   :  { %955 = vrot.lane.b32.xlu0 %v3930_v1, %s3866_s0  ;;  %953 = vrot.lane.b32.xlu1 %v3921_v0, %s3866_s0 }
  0x16   :  { %1147 = vrot.lane.b32.xlu0 %v3930_v1, %s3867_s13  ;;  %1145 = vrot.lane.b32.xlu1 %v3921_v0, %s3867_s13 }
  0x1a   :  { %1339 = vrot.lane.b32.xlu0 %v3930_v1, %s3868_s14  ;;  %1337 = vrot.lane.b32.xlu1 %v3921_v0, %s3868_s14 }
  0x1e   :  { %1531 = vrot.lane.b32.xlu0 %v3930_v1, %s3869_s15  ;;  %1529 = vrot.lane.b32.xlu1 %v3921_v0, %s3869_s15  ;;  %v3148_v1 = vld [vmem:[%s4896_s1 + $0x90] sm:$0xff] }
  0x74   :  { %v66_v9 = vpop.permute.xlu0 %65  ;;  %v35_v10 = vpop.permute.xlu1 %34 }
  0x75   :  { %v73_v16 = vsel %vm69_vm0, 0.0, %v66_v9  ;;  %v42_v18 = vsel %vm38_vm1, 0.0, %v35_v10 }
  0x76   :  { %v87_v25 = vmul.f32 %v3978_v13, %v73_v16  ;;  %v55_v26 = vmul.f32 %v3981_v14, %v42_v18  ;;  %v4156_v16 = vrot.slane %v3183_v55, %v3963_v6  ;;  %v3203_v55 = vld [vmem:[%s4896_s1 + $0x140] sm:$0xff] }
  0x78   :  { %v68_v17 = vpop.permute.xlu0 %67  ;;  %v37_v19 = vpop.permute.xlu1 %36 }
  0x79   :  { %v70_v20 = vsel %vm69_vm0, %v66_v9, %v68_v17  ;;  %v39_v21 = vsel %vm38_vm1, %v35_v10, %v37_v19  ;;  %v3202_v9 = vld [vmem:[%s4898_s3 + $0xa] sm:$0x3]  ;;  %v3165_v19 = vld [vmem:[%s4896_s1 + $0xc0] sm:$0xff] }
  0x7a   :  { %v88_v22 = vmul.f32 %v3972_v11, %v70_v20  ;;  %v56_v23 = vmul.f32 %v3975_v12, %v39_v21  ;;  %v4159_v17 = vrot.slane %v3202_v9, %v3961_v5  ;;  %v783_v20 = vmul.f32 %v4156_v16, %v3921_v0  ;;  %v3167_v0 = vld [vmem:[%s4896_s1 + $0xd0] sm:$0xff] }
  0x7c   :  { %3125 = vmatprep.subr.msk.mxu0 %vm123_vm2, %v88_v22  ;;  %v389_v28 = vpop.permute.xlu1 %388  ;;  %v387_v29 = vpop.permute.xlu0 %386  ;;  %v3166_v22 = vld [vmem:[%s4896_s1 + $0xc8] sm:$0xff] }
  0x7d   :  { %3126 = vmatpush1.msk.msra.mxu0 %vm123_vm2, %v87_v25  ;;  %v391_v30 = vsel %vm390_vm3, %v387_v29, %v389_v28  ;;  %v394_v43 = vsel %vm390_vm3, 0.0, %v387_v29  ;;  %v3169_v25 = vld [vmem:[%s4896_s1 + $0xe0] sm:$0xff]  ;;  %v3221_v29 = vld [vmem:[%s4898_s3 + $0xc] sm:$0x3] }
  0x7e   :  { %3127 = vmatmul.mubr.msk.f32.vlgmr.msra.gmra.mrb[0].mxu0 %vm98_vm4, %v3117_v27  ;;  %3135 = vmatprep.subr.msk.mxu0 %vm123_vm2, %v56_v23  ;;  %v409_v31 = vmul.f32 %v3993_v24, %v391_v30  ;;  %v408_v47 = vmul.f32 %v4046_v42, %v394_v43  ;;  %v3168_v23 = vld [vmem:[%s4896_s1 + $0xd8] sm:$0xff]  ;;  %v3171_v27 = vld [vmem:[%s4896_s1 + $0xf0] sm:$0xff]  ;;  %v3188_v43 = vld [vmem:[%s4896_s1 + $0x120] sm:$0xff] }
  0x7f   :  { %200 = vmatprep.mubr.f32.mxu0 %v3863_v2  ;;  %3136 = vmatpush1.msk.msra.mxu0 %vm123_vm2, %v55_v26  ;;  %v3170_v26 = vld [vmem:[%s4896_s1 + $0xe8] sm:$0xff] }
  0x80   :  { %3154 = vmatprep.subr.msk.mxu0 %vm123_vm2, %v409_v31  ;;  %v581_v39 = vpop.permute.xlu1 %580  ;;  %v579_v40 = vpop.permute.xlu0 %578  ;;  %v3172_v31 = vld [vmem:[%s4896_s1 + $0xf8] sm:$0xff] }
  0x81   :  { %v583_v45 = vsel %vm582_vm5, %v579_v40, %v581_v39  ;;  %v586_v58 = vsel %vm582_vm5, 0.0, %v579_v40  ;;  %v3185_v39 = vld [vmem:[%s4896_s1 + $0x108] sm:$0xff]  ;;  %v3186_v40 = vld [vmem:[%s4896_s1 + $0x110] sm:$0xff] }
  0x82   :  { %3128 = vmatmul.mubr.msk.f32.gmra.mrb[2].mxu0 %vm98_vm4, %v3118_v32  ;;  %v601_v48 = vmul.f32 %v4050_v44, %v583_v45  ;;  %v600_v61 = vmul.f32 %v4101_v57, %v586_v58  ;;  %v4211_v32 = vrot.slane %v3202_v9, %v3963_v6  ;;  %v3189_v45 = vld [vmem:[%s4896_s1 + $0x128] sm:$0xff]  ;;  %v3870_v58 = vmov 1.0|1.0  }
  0x83   :  { %206 = vmatprep.mubr.f32.mxu0 %v3863_v2  ;;  %3477 = vmatprep.subr.bf16.mxu1 %v3870_v58 }
  0x84   :  { %v956_v10 = vpop.permute.xlu0 %955  ;;  %v954_v28 = vpop.permute.xlu1 %953  ;;  %3478 = vmatpush3.bf16.msra.mxu1 %v3870_v58 }
  0x85   :  { %v961_v18 = vsel %vm957_vm6, %v956_v10, 0.0  ;;  %3479 = vmatprep.subr.bf16.mxu1 %v3870_v58 }
  0x86   :  { %3129 = vmatmul.mubr.msk.f32.gmra.mrb[4].mxu0 %vm98_vm4, %v3119_v33  ;;  %v976_v21 = vmul.f32 %v4159_v17, %v961_v18  ;;  %v958_v33 = vsel %vm957_vm6, %v954_v28, %v956_v10  ;;  %v3210_v10 = vld [vmem:[%s4896_s1 + $0x178] sm:$0xff]  ;;  %v3228_v28 = vld [vmem:[%s4896_s1 + $0x1b0] sm:$0xff] }
  0x87   :  { %212 = vmatprep.mubr.f32.mxu0 %v3863_v2 }
  0x88   :  { %v1148_v30 = vpop.permute.xlu0 %1147  ;;  %3480 = vmatpush3.bf16.msra.mxu1 %v3870_v58 }
  0x89   :  { %3481 = vmatprep.subr.bf16.mxu1 %v3870_v58 }
  0x8a   :  { %3130 = vmatmul.mubr.msk.f32.gmra.mrb[6].mxu0 %vm98_vm4, %v3120_v34  ;;  %v4215_v34 = vrot.slane %v3221_v29, %v3961_v5 }
  0x8b   :  { %218 = vmatprep.mubr.f32.mxu0 %v3863_v2 }
  0x8c   :  { %3482 = vmatpush3.bf16.msra.mxu1 %v3870_v58 }
  0x8d   :  { %3483 = vmatprep.subr.bf16.mxu1 %v3870_v58 }
  0x8e   :  { %3131 = vmatmul.mubr.msk.f32.gmra.mrb[8].mxu0 %vm98_vm4, %v3121_v35  ;;  %v1153_v35 = vsel %vm1149_vm7, %v1148_v30, 0.0 }
  0x8f   :  { %224 = vmatprep.mubr.f32.mxu0 %v3863_v2  ;;  %v1168_v38 = vmul.f32 %v4215_v34, %v1153_v35  ;;  %v3241_v35 = vld [vmem:[%s4896_s1 + $0x1c0] sm:$0xff] }
  0x90   :  { %3484 = vmatpush3.bf16.msra.mxu1 %v3870_v58 }
  0x91   :  { %3485 = vmatprep.subr.bf16.mxu1 %v3870_v58 }
  0x92   :  { %3132 = vmatmul.mubr.msk.f32.gmra.mrb[10].mxu0 %vm98_vm4, %v3122_v36  ;;  %v3184_v36 = vld [vmem:[%s4896_s1 + $0x100] sm:$0xff] }
  0x93   :  { %230 = vmatprep.mubr.f32.mxu0 %v3863_v2 }
  0x94   :  { %3486 = vmatpush3.bf16.msra.mxu1 %v3870_v58 }
  0x95   :  { %3487 = vmatprep.subr.bf16.mxu1 %v3870_v58 }
  0x96   :  { %3133 = vmatmul.mubr.msk.f32.gmra.mrb[12].mxu0 %vm98_vm4, %v3123_v37  ;;  %v975_v37 = vmul.f32 %v4211_v32, %v958_v33 }
  0x97   :  { %236 = vmatprep.mubr.f32.mxu0 %v3863_v2 }
  0x98   :  { %3488 = vmatpush3.bf16.msra.mxu1 %v3870_v58 }
  0x99   :  { %3489 = vmatprep.subr.bf16.mxu1 %v3870_v58 }
  0x9a   :  { %3134 = vmatmul.mubr.msk.f32.gmra.mrb[14].mxu0 %vm98_vm4, %v3124_v41  ;;  %v3187_v41 = vld [vmem:[%s4896_s1 + $0x118] sm:$0xff] }
  0x9b   :  { %337 = vmatprep.mubr.f32.mxu0 %v3863_v2 }
  0x9c   :  { %3490 = vmatpush3.bf16.msra.mxu1 %v3870_v58 }
  0x9d   :  { %3491 = vmatprep.subr.bf16.mxu1 %v3870_v58 }
  0x9e   :  { %3137 = vmatmul.mubr.msk.f32.vlgmr.msra.gmra.mrb[0].mxu0 %vm98_vm4, %v57_v46  ;;  %v3190_v46 = vld [vmem:[%s4896_s1 + $0x130] sm:$0xff] }
  0x9f   :  { %343 = vmatprep.mubr.f32.mxu0 %v3863_v2  ;;  %3155 = vmatpush1.msk.msra.mxu0 %vm123_vm2, %v408_v47  ;;  %v1146_v47 = vpop.permute.xlu1 %1145 }
  0xa0   :  { %3173 = vmatprep.subr.msk.mxu0 %vm123_vm2, %v601_v48  ;;  %v3240_v48 = vld [vmem:[%s4898_s3 + $0xe] sm:$0x3]  ;;  %3492 = vmatpush3.bf16.msra.mxu1 %v3870_v58 }
  0xa1   :  { %3493 = vmatprep.subr.bf16.mxu1 %v3870_v58 }
  0xa2   :  { %3138 = vmatmul.mubr.msk.f32.gmra.mrb[2].mxu0 %vm98_vm4, %v58_v49  ;;  %v1340_v49 = vpop.permute.xlu0 %1339 }
  0xa3   :  { %349 = vmatprep.mubr.f32.mxu0 %v3863_v2 }
  0xa6   :  { %3139 = vmatmul.mubr.msk.f32.gmra.mrb[4].mxu0 %vm98_vm4, %v59_v50  ;;  %v3191_v50 = vld [vmem:[%s4896_s1 + $0x138] sm:$0xff]  ;;  %v1532_v9 = vpop.permute.xlu0 %1531 }
  0xa7   :  { %355 = vmatprep.mubr.f32.mxu0 %v3863_v2 }
  0xaa   :  { %3140 = vmatmul.mubr.msk.f32.gmra.mrb[6].mxu0 %vm98_vm4, %v60_v51  ;;  %v4266_v51 = vrot.slane %v3221_v29, %v3963_v6 }
  0xab   :  { %361 = vmatprep.mubr.f32.mxu0 %v3863_v2 }
  0xae   :  { %3141 = vmatmul.mubr.msk.f32.gmra.mrb[8].mxu0 %vm98_vm4, %v61_v52  ;;  %v1150_v52 = vsel %vm1149_vm7, %v1146_v47, %v1148_v30  ;;  %v3229_v30 = vld [vmem:[%s4896_s1 + $0x1b8] sm:$0xff]  ;;  %v3262_v47 = vld [vmem:[%s4896_s1 + $0x210] sm:$0xff] }
  0xaf   :  { %367 = vmatprep.mubr.f32.mxu0 %v3863_v2 }
  0xb2   :  { %3142 = vmatmul.mubr.msk.f32.gmra.mrb[10].mxu0 %vm98_vm4, %v62_v53  ;;  %v4270_v53 = vrot.slane %v3240_v48, %v3961_v5 }
  0xb3   :  { %373 = vmatprep.mubr.f32.mxu0 %v3863_v2 }
  0xb6   :  { %3143 = vmatmul.mubr.msk.f32.gmra.mrb[12].mxu0 %vm98_vm4, %v63_v54  ;;  %v1345_v54 = vsel %vm1341_vm8, %v1340_v49, 0.0 }
  0xb7   :  { %379 = vmatprep.mubr.f32.mxu0 %v3863_v2 }
  0xba   :  { %3144 = vmatmul.mubr.msk.f32.gmra.mrb[14].mxu0 %vm98_vm4, %v64_v56  ;;  %v1167_v56 = vmul.f32 %v4266_v51, %v1150_v52  ;;  %v3266_v52 = vld [vmem:[%s4896_s1 + $0x230] sm:$0xff] }
  0xbb   :  { %513 = vmatprep.mubr.f32.mxu0 %v3863_v2 }
  0xbe   :  { %3156 = vmatmul.mubr.msk.f32.vlgmr.msra.gmra.mrb[0].mxu0 %vm98_vm4, %v3146_v60  ;;  %v1360_v60 = vmul.f32 %v4270_v53, %v1345_v54  ;;  %v3267_v54 = vld [vmem:[%s4896_s1 + $0x238] sm:$0xff] }
  0xbf   :  { %519 = vmatprep.mubr.f32.mxu0 %v3863_v2  ;;  %3174 = vmatpush1.msk.msra.mxu0 %vm123_vm2, %v600_v61  ;;  %v3204_v61 = vld [vmem:[%s4896_s1 + $0x148] sm:$0xff] }
  0xc0   :  { %3192 = vmatprep.subr.msk.mxu0 %vm123_vm2, %v784_v62  ;;  %v3205_v62 = vld [vmem:[%s4896_s1 + $0x150] sm:$0xff] }
  0xc2   :  { %3157 = vmatmul.mubr.msk.f32.gmra.mrb[2].mxu0 %vm98_vm4, %v3147_v63  ;;  %v3206_v63 = vld [vmem:[%s4896_s1 + $0x158] sm:$0xff] }
  0xc3   :  { %525 = vmatprep.mubr.f32.mxu0 %v3863_v2 }
  0xc6   :  { %3158 = vmatmul.mubr.msk.f32.gmra.mrb[4].mxu0 %vm98_vm4, %v3148_v1  ;;  %v3207_v1 = vld [vmem:[%s4896_s1 + $0x160] sm:$0xff] }
  0xc7   :  { %531 = vmatprep.mubr.f32.mxu0 %v3863_v2 }
  0xca   :  { %3159 = vmatmul.mubr.msk.f32.gmra.mrb[6].mxu0 %vm98_vm4, %v3149_v3  ;;  %v3208_v3 = vld [vmem:[%s4896_s1 + $0x168] sm:$0xff] }
  0xcb   :  { %537 = vmatprep.mubr.f32.mxu0 %v3863_v2 }
  0xce   :  { %3160 = vmatmul.mubr.msk.f32.gmra.mrb[8].mxu0 %vm98_vm4, %v3150_v4  ;;  %v3209_v4 = vld [vmem:[%s4896_s1 + $0x170] sm:$0xff] }
  0xcf   :  { %543 = vmatprep.mubr.f32.mxu0 %v3863_v2 }
  0xd2   :  { %3161 = vmatmul.mubr.msk.f32.gmra.mrb[10].mxu0 %vm98_vm4, %v3151_v7  ;;  %v1338_v7 = vpop.permute.xlu1 %1337 }
  0xd3   :  { %549 = vmatprep.mubr.f32.mxu0 %v3863_v2  ;;  %v1342_v18 = vsel %vm1341_vm8, %v1338_v7, %v1340_v49  ;;  %v3264_v49 = vld [vmem:[%s4896_s1 + $0x220] sm:$0xff] }
  0xd6   :  { %3162 = vmatmul.mubr.msk.f32.gmra.mrb[12].mxu0 %vm98_vm4, %v3152_v8  ;;  %v3259_v8 = vld [vmem:[%s4898_s3 + $0x10] sm:$0x3]  ;;  %v1530_v29 = vpop.permute.xlu1 %1529 }
  0xd7   :  { %555 = vmatprep.mubr.f32.mxu0 %v3863_v2  ;;  %v1534_v33 = vsel %vm1533_vm9, %v1530_v29, %v1532_v9 }
  0xda   :  { %3163 = vmatmul.mubr.msk.f32.gmra.mrb[14].mxu0 %vm98_vm4, %v3153_v15  ;;  %v4336_v15 = vrot.slane %v3240_v48, %v3963_v6  ;;  %v3263_v48 = vld [vmem:[%s4896_s1 + $0x218] sm:$0xff] }
  0xdb   :  { %705 = vmatprep.mubr.f32.mxu0 %v3863_v2 }
  0xde   :  { %3175 = vmatmul.mubr.msk.f32.vlgmr.msra.gmra.mrb[0].mxu0 %vm98_vm4, %v3165_v19  ;;  %v4340_v19 = vrot.slane %v3259_v8, %v3961_v5  ;;  %v3223_v5 = vld [vmem:[%s4896_s1 + $0x188] sm:$0xff] }
  0xdf   :  { %711 = vmatprep.mubr.f32.mxu0 %v3863_v2  ;;  %3193 = vmatpush1.msk.msra.mxu0 %vm123_vm2, %v783_v20  ;;  %v1537_v20 = vsel %vm1533_vm9, %v1532_v9, 0.0 }
  0xe0   :  { %3211 = vmatprep.subr.msk.mxu0 %vm123_vm2, %v976_v21  ;;  %v3222_v21 = vld [vmem:[%s4896_s1 + $0x180] sm:$0xff] }
  0xe2   :  { %3176 = vmatmul.mubr.msk.f32.gmra.mrb[2].mxu0 %vm98_vm4, %v3166_v22  ;;  %v1359_v22 = vmul.f32 %v4336_v15, %v1342_v18 }
  0xe3   :  { %717 = vmatprep.mubr.f32.mxu0 %v3863_v2 }
  0xe6   :  { %3177 = vmatmul.mubr.msk.f32.gmra.mrb[4].mxu0 %vm98_vm4, %v3167_v0  ;;  %v1552_v0 = vmul.f32 %v4340_v19, %v1537_v20 }
  0xe7   :  { %723 = vmatprep.mubr.f32.mxu0 %v3863_v2 }
  0xea   :  { %3178 = vmatmul.mubr.msk.f32.gmra.mrb[6].mxu0 %vm98_vm4, %v3168_v23  ;;  %v3224_v23 = vld [vmem:[%s4896_s1 + $0x190] sm:$0xff] }
  0xeb   :  { %729 = vmatprep.mubr.f32.mxu0 %v3863_v2 }
  0xee   :  { %3179 = vmatmul.mubr.msk.f32.gmra.mrb[8].mxu0 %vm98_vm4, %v3169_v25  ;;  %v3225_v25 = vld [vmem:[%s4896_s1 + $0x198] sm:$0xff] }
  0xef   :  { %735 = vmatprep.mubr.f32.mxu0 %v3863_v2 }
  0xf2   :  { %3180 = vmatmul.mubr.msk.f32.gmra.mrb[10].mxu0 %vm98_vm4, %v3170_v26  ;;  %v3226_v26 = vld [vmem:[%s4896_s1 + $0x1a0] sm:$0xff] }
  0xf3   :  { %741 = vmatprep.mubr.f32.mxu0 %v3863_v2 }
  0xf6   :  { %3181 = vmatmul.mubr.msk.f32.gmra.mrb[12].mxu0 %vm98_vm4, %v3171_v27  ;;  %v3227_v27 = vld [vmem:[%s4896_s1 + $0x1a8] sm:$0xff] }
  0xf7   :  { %747 = vmatprep.mubr.f32.mxu0 %v3863_v2 }
  0xfa   :  { %3182 = vmatmul.mubr.msk.f32.gmra.mrb[14].mxu0 %vm98_vm4, %v3172_v31  ;;  %v4390_v31 = vrot.slane %v3259_v8, %v3963_v6  ;;  %v3242_v6 = vld [vmem:[%s4896_s1 + $0x1c8] sm:$0xff] }
  0xfb   :  { %888 = vmatprep.mubr.f32.mxu0 %v3863_v2 }
  0xfe   :  { %3194 = vmatmul.mubr.msk.f32.vlgmr.msra.gmra.mrb[0].mxu0 %vm98_vm4, %v3184_v36  ;;  %v1551_v36 = vmul.f32 %v4390_v31, %v1534_v33 }
  0xff   :  { %894 = vmatprep.mubr.f32.mxu0 %v3863_v2  ;;  %3212 = vmatpush1.msk.msra.mxu0 %vm123_vm2, %v975_v37  ;;  %v3243_v37 = vld [vmem:[%s4896_s1 + $0x1d0] sm:$0xff] }
 0x100   :  { %3230 = vmatprep.subr.msk.mxu0 %vm123_vm2, %v1168_v38  ;;  %v3244_v38 = vld [vmem:[%s4896_s1 + $0x1d8] sm:$0xff] }
 0x102   :  { %3195 = vmatmul.mubr.msk.f32.gmra.mrb[2].mxu0 %vm98_vm4, %v3185_v39  ;;  %v3245_v39 = vld [vmem:[%s4896_s1 + $0x1e0] sm:$0xff] }
 0x103   :  { %900 = vmatprep.mubr.f32.mxu0 %v3863_v2 }
 0x106   :  { %3196 = vmatmul.mubr.msk.f32.gmra.mrb[4].mxu0 %vm98_vm4, %v3186_v40  ;;  %v3246_v40 = vld [vmem:[%s4896_s1 + $0x1e8] sm:$0xff] }
 0x107   :  { %906 = vmatprep.mubr.f32.mxu0 %v3863_v2 }
 0x10a   :  { %3197 = vmatmul.mubr.msk.f32.gmra.mrb[6].mxu0 %vm98_vm4, %v3187_v41  ;;  %v3247_v41 = vld [vmem:[%s4896_s1 + $0x1f0] sm:$0xff] }
 0x10b   :  { %912 = vmatprep.mubr.f32.mxu0 %v3863_v2 }
 0x10e   :  { %3198 = vmatmul.mubr.msk.f32.gmra.mrb[8].mxu0 %vm98_vm4, %v3188_v43  ;;  %v3248_v43 = vld [vmem:[%s4896_s1 + $0x1f8] sm:$0xff] }
 0x10f   :  { %918 = vmatprep.mubr.f32.mxu0 %v3863_v2 }
 0x112   :  { %3199 = vmatmul.mubr.msk.f32.gmra.mrb[10].mxu0 %vm98_vm4, %v3189_v45  ;;  %v3260_v45 = vld [vmem:[%s4896_s1 + $0x200] sm:$0xff] }
 0x113   :  { %924 = vmatprep.mubr.f32.mxu0 %v3863_v2 }
 0x116   :  { %3200 = vmatmul.mubr.msk.f32.gmra.mrb[12].mxu0 %vm98_vm4, %v3190_v46  ;;  %v3261_v46 = vld [vmem:[%s4896_s1 + $0x208] sm:$0xff] }
 0x117   :  { %930 = vmatprep.mubr.f32.mxu0 %v3863_v2 }
 0x11a   :  { %3201 = vmatmul.mubr.msk.f32.gmra.mrb[14].mxu0 %vm98_vm4, %v3191_v50  ;;  %v3265_v50 = vld [vmem:[%s4896_s1 + $0x228] sm:$0xff] }
 0x11b   :  { %1080 = vmatprep.mubr.f32.mxu0 %v3863_v2 }
 0x11e   :  { %3213 = vmatmul.mubr.msk.f32.vlgmr.msra.gmra.mrb[0].mxu0 %vm98_vm4, %v3203_v55 }
 0x11f   :  { %1086 = vmatprep.mubr.f32.mxu0 %v3863_v2  ;;  %3231 = vmatpush1.msk.msra.mxu0 %vm123_vm2, %v1167_v56 }
 0x120   :  { %3249 = vmatprep.subr.msk.mxu0 %vm123_vm2, %v1360_v60 }
 0x122   :  { %3214 = vmatmul.mubr.msk.f32.gmra.mrb[2].mxu0 %vm98_vm4, %v3204_v61 }
 0x123   :  { %1092 = vmatprep.mubr.f32.mxu0 %v3863_v2 }
 0x126   :  { %3215 = vmatmul.mubr.msk.f32.gmra.mrb[4].mxu0 %vm98_vm4, %v3205_v62 }
 0x127   :  { %1098 = vmatprep.mubr.f32.mxu0 %v3863_v2 }
 0x12a   :  { %3216 = vmatmul.mubr.msk.f32.gmra.mrb[6].mxu0 %vm98_vm4, %v3206_v63 }
 0x12b   :  { %1104 = vmatprep.mubr.f32.mxu0 %v3863_v2 }
 0x12e   :  { %3217 = vmatmul.mubr.msk.f32.gmra.mrb[8].mxu0 %vm98_vm4, %v3207_v1 }
 0x12f   :  { %1110 = vmatprep.mubr.f32.mxu0 %v3863_v2 }
 0x132   :  { %3218 = vmatmul.mubr.msk.f32.gmra.mrb[10].mxu0 %vm98_vm4, %v3208_v3 }
 0x133   :  { %1116 = vmatprep.mubr.f32.mxu0 %v3863_v2 }
 0x136   :  { %3219 = vmatmul.mubr.msk.f32.gmra.mrb[12].mxu0 %vm98_vm4, %v3209_v4 }
 0x137   :  { %1122 = vmatprep.mubr.f32.mxu0 %v3863_v2 }
 0x13a   :  { %3220 = vmatmul.mubr.msk.f32.gmra.mrb[14].mxu0 %vm98_vm4, %v3210_v10 }
 0x13b   :  { %1272 = vmatprep.mubr.f32.mxu0 %v3863_v2 }
 0x13e   :  { %3232 = vmatmul.mubr.msk.f32.vlgmr.msra.gmra.mrb[0].mxu0 %vm98_vm4, %v3222_v21 }
 0x13f   :  { %1278 = vmatprep.mubr.f32.mxu0 %v3863_v2  ;;  %3250 = vmatpush1.msk.msra.mxu0 %vm123_vm2, %v1359_v22  ;;  %v3871_v22 = vmov 0  }
 0x140   :  { %3268 = vmatprep.subr.msk.mxu0 %vm123_vm2, %v1552_v0  ;;  %3825 = vset.pattern.permute.xlu0 %v3871_v22 }
 0x141   :  { %3826 = vset.pattern.permute.xlu1 %v3871_v22 }
 0x142   :  { %3233 = vmatmul.mubr.msk.f32.gmra.mrb[2].mxu0 %vm98_vm4, %v3223_v5 }
 0x143   :  { %1284 = vmatprep.mubr.f32.mxu0 %v3863_v2 }
 0x146   :  { %3234 = vmatmul.mubr.msk.f32.gmra.mrb[4].mxu0 %vm98_vm4, %v3224_v23 }
 0x147   :  { %1290 = vmatprep.mubr.f32.mxu0 %v3863_v2 }
 0x14a   :  { %3235 = vmatmul.mubr.msk.f32.gmra.mrb[6].mxu0 %vm98_vm4, %v3225_v25 }
 0x14b   :  { %1296 = vmatprep.mubr.f32.mxu0 %v3863_v2 }
 0x14e   :  { %3236 = vmatmul.mubr.msk.f32.gmra.mrb[8].mxu0 %vm98_vm4, %v3226_v26 }
 0x14f   :  { %1302 = vmatprep.mubr.f32.mxu0 %v3863_v2 }
 0x152   :  { %3237 = vmatmul.mubr.msk.f32.gmra.mrb[10].mxu0 %vm98_vm4, %v3227_v27 }
 0x153   :  { %1308 = vmatprep.mubr.f32.mxu0 %v3863_v2 }
 0x156   :  { %3238 = vmatmul.mubr.msk.f32.gmra.mrb[12].mxu0 %vm98_vm4, %v3228_v28 }
 0x157   :  { %1314 = vmatprep.mubr.f32.mxu0 %v3863_v2 }
 0x15a   :  { %3239 = vmatmul.mubr.msk.f32.gmra.mrb[14].mxu0 %vm98_vm4, %v3229_v30 }
 0x15b   :  { %1464 = vmatprep.mubr.f32.mxu0 %v3863_v2 }
 0x15e   :  { %3251 = vmatmul.mubr.msk.f32.vlgmr.msra.gmra.mrb[0].mxu0 %vm98_vm4, %v3241_v35 }
 0x15f   :  { %1470 = vmatprep.mubr.f32.mxu0 %v3863_v2  ;;  %3269 = vmatpush1.msk.msra.mxu0 %vm123_vm2, %v1551_v36 }
 0x162   :  { %3252 = vmatmul.mubr.msk.f32.gmra.mrb[2].mxu0 %vm98_vm4, %v3242_v6 }
 0x163   :  { %1476 = vmatprep.mubr.f32.mxu0 %v3863_v2 }
 0x166   :  { %3253 = vmatmul.mubr.msk.f32.gmra.mrb[4].mxu0 %vm98_vm4, %v3243_v37 }
 0x167   :  { %1482 = vmatprep.mubr.f32.mxu0 %v3863_v2 }
 0x16a   :  { %3254 = vmatmul.mubr.msk.f32.gmra.mrb[6].mxu0 %vm98_vm4, %v3244_v38 }
 0x16b   :  { %1488 = vmatprep.mubr.f32.mxu0 %v3863_v2 }
 0x16e   :  { %3255 = vmatmul.mubr.msk.f32.gmra.mrb[8].mxu0 %vm98_vm4, %v3245_v39 }
 0x16f   :  { %1494 = vmatprep.mubr.f32.mxu0 %v3863_v2 }
 0x172   :  { %3256 = vmatmul.mubr.msk.f32.gmra.mrb[10].mxu0 %vm98_vm4, %v3246_v40 }
 0x173   :  { %1500 = vmatprep.mubr.f32.mxu0 %v3863_v2 }
 0x176   :  { %3257 = vmatmul.mubr.msk.f32.gmra.mrb[12].mxu0 %vm98_vm4, %v3247_v41 }
 0x177   :  { %1506 = vmatprep.mubr.f32.mxu0 %v3863_v2 }
 0x17a   :  { %3258 = vmatmul.mubr.msk.f32.gmra.mrb[14].mxu0 %vm98_vm4, %v3248_v43 }
 0x17b   :  { %1656 = vmatprep.mubr.f32.mxu0 %v3863_v2 }
 0x17e   :  { %3270 = vmatmul.mubr.msk.f32.vlgmr.msra.gmra.mrb[0].mxu0 %vm98_vm4, %v3260_v45 }
 0x17f   :  { %1662 = vmatprep.mubr.f32.mxu0 %v3863_v2 }
 0x182   :  { %3271 = vmatmul.mubr.msk.f32.gmra.mrb[2].mxu0 %vm98_vm4, %v3261_v46 }
 0x183   :  { %1668 = vmatprep.mubr.f32.mxu0 %v3863_v2 }
 0x186   :  { %3272 = vmatmul.mubr.msk.f32.gmra.mrb[4].mxu0 %vm98_vm4, %v3262_v47 }
 0x187   :  { %1674 = vmatprep.mubr.f32.mxu0 %v3863_v2 }
 0x18a   :  { %3273 = vmatmul.mubr.msk.f32.gmra.mrb[6].mxu0 %vm98_vm4, %v3263_v48 }
 0x18b   :  { %1680 = vmatprep.mubr.f32.mxu0 %v3863_v2 }
 0x18e   :  { %3274 = vmatmul.mubr.msk.f32.gmra.mrb[8].mxu0 %vm98_vm4, %v3264_v49 }
 0x18f   :  { %1686 = vmatprep.mubr.f32.mxu0 %v3863_v2 }
 0x192   :  { %3275 = vmatmul.mubr.msk.f32.gmra.mrb[10].mxu0 %vm98_vm4, %v3265_v50 }
 0x193   :  { %1692 = vmatprep.mubr.f32.mxu0 %v3863_v2 }
 0x196   :  { %3276 = vmatmul.mubr.msk.f32.gmra.mrb[12].mxu0 %vm98_vm4, %v3266_v52 }
 0x197   :  { %1698 = vmatprep.mubr.f32.mxu0 %v3863_v2 }
 0x19a   :  { %3277 = vmatmul.mubr.msk.f32.gmra.mrb[14].mxu0 %vm98_vm4, %v3267_v54 }
 0x251   :  { %v4476_v55 = vpop.f32.mrb[0].mxu0 }
 0x252   :  { %v4478_v56 = vpop.f32.mrb[1].mxu0 }
 0x253   :  { %1793 = vmatprep.mubr.f32.mxu1 %v4478_v56 }
 0x254   :  { %1794 = vmatmul.mubr.f32.vlgmr.msra.gmra.mrb[0].mxu1 %v4476_v55 }
 0x255   :  { %v4482_v60 = vpop.f32.mrb[2].mxu0  ;;  %3494 = vmatpush3.bf16.msra.mxu1 %v3870_v58 }
 0x256   :  { %v4485_v61 = vpop.f32.mrb[3].mxu0  ;;  %3495 = vmatprep.subr.bf16.mxu1 %v3870_v58 }
 0x257   :  { %1798 = vmatprep.mubr.f32.mxu1 %v4485_v61 }
 0x258   :  { %1799 = vmatmul.mubr.f32.gmra.mrb[2].mxu1 %v4482_v60 }
 0x259   :  { %v4490_v62 = vpop.f32.mrb[4].mxu0  ;;  %3496 = vmatpush3.bf16.msra.mxu1 %v3870_v58 }
 0x25a   :  { %v4493_v63 = vpop.f32.mrb[5].mxu0  ;;  %3497 = vmatprep.subr.bf16.mxu1 %v3870_v58 }
 0x25b   :  { %1803 = vmatprep.mubr.f32.mxu1 %v4493_v63 }
 0x25c   :  { %1804 = vmatmul.mubr.f32.gmra.mrb[4].mxu1 %v4490_v62 }
 0x25d   :  { %v4498_v1 = vpop.f32.mrb[6].mxu0  ;;  %3498 = vmatpush3.bf16.msra.mxu1 %v3870_v58 }
 0x25e   :  { %v4501_v3 = vpop.f32.mrb[7].mxu0  ;;  %3499 = vmatprep.subr.bf16.mxu1 %v3870_v58 }
 0x25f   :  { %1808 = vmatprep.mubr.f32.mxu1 %v4501_v3 }
 0x260   :  { %1809 = vmatmul.mubr.f32.gmra.mrb[6].mxu1 %v4498_v1 }
 0x261   :  { %v4506_v4 = vpop.f32.mrb[8].mxu0  ;;  %3500 = vmatpush3.bf16.msra.mxu1 %v3870_v58 }
 0x262   :  { %v4509_v7 = vpop.f32.mrb[9].mxu0  ;;  %3501 = vmatprep.subr.bf16.mxu1 %v3870_v58 }
 0x263   :  { %1813 = vmatprep.mubr.f32.mxu1 %v4509_v7 }
 0x264   :  { %1814 = vmatmul.mubr.f32.gmra.mrb[8].mxu1 %v4506_v4 }
 0x265   :  { %v4514_v8 = vpop.f32.mrb[10].mxu0  ;;  %3502 = vmatpush3.bf16.msra.mxu1 %v3870_v58 }
 0x266   :  { %v4517_v9 = vpop.f32.mrb[11].mxu0  ;;  %3503 = vmatprep.subr.bf16.mxu1 %v3870_v58 }
 0x267   :  { %1818 = vmatprep.mubr.f32.mxu1 %v4517_v9 }
 0x268   :  { %1819 = vmatmul.mubr.f32.gmra.mrb[10].mxu1 %v4514_v8 }
 0x269   :  { %v4522_v10 = vpop.f32.mrb[12].mxu0  ;;  %3504 = vmatpush3.bf16.msra.mxu1 %v3870_v58 }
 0x26a   :  { %v4525_v18 = vpop.f32.mrb[13].mxu0  ;;  %3505 = vmatprep.subr.bf16.mxu1 %v3870_v58 }
 0x26b   :  { %1823 = vmatprep.mubr.f32.mxu1 %v4525_v18 }
 0x26c   :  { %1824 = vmatmul.mubr.f32.gmra.mrb[12].mxu1 %v4522_v10 }
 0x26d   :  { %v4530_v20 = vpop.f32.mrb[14].mxu0  ;;  %3506 = vmatpush3.bf16.msra.mxu1 %v3870_v58 }
 0x26e   :  { %v4533_v21 = vpop.f32.mrb[15].mxu0  ;;  %3507 = vmatprep.subr.bf16.mxu1 %v3870_v58 }
 0x26f   :  { %1828 = vmatprep.mubr.f32.mxu1 %v4533_v21 }
 0x270   :  { %1829 = vmatmul.mubr.f32.gmra.mrb[14].mxu1 %v4530_v20 }
 0x271   :  { %3508 = vmatpush3.bf16.msra.mxu1 %v3870_v58 }
 0x327   :  { %v3327_v0 = vpop.f32.mrb[0].mxu1 }
 0x328   :  { %v3328_v5 = vpop.f32.mrb[1].mxu1 }
 0x329   :  { %v3329_v23 = vadd.f32 %v3328_v5, %v3327_v0 }
 0x32b   :  { %v3330_v25 = vpop.f32.mrb[2].mxu1 }
 0x32c   :  { %v3331_v26 = vpop.f32.mrb[3].mxu1 }
 0x32d   :  { %v3332_v27 = vadd.f32 %v3331_v26, %v3330_v25 }
 0x32f   :  { %v3333_v28 = vpop.f32.mrb[4].mxu1 }
 0x330   :  { %v3334_v29 = vpop.f32.mrb[5].mxu1 }
 0x331   :  { %v3335_v30 = vadd.f32 %v3334_v29, %v3333_v28 }
 0x333   :  { %v3336_v33 = vpop.f32.mrb[6].mxu1 }
 0x334   :  { %v3337_v35 = vpop.f32.mrb[7].mxu1 }
 0x335   :  { %v3338_v36 = vadd.f32 %v3337_v35, %v3336_v33 }
 0x337   :  { %v3339_v6 = vpop.f32.mrb[8].mxu1 }
 0x338   :  { %v3340_v37 = vpop.f32.mrb[9].mxu1 }
 0x339   :  { %v3341_v38 = vadd.f32 %v3340_v37, %v3339_v6 }
 0x33b   :  { %v1834_v39 = vadd.f32 %v3341_v38, %v3329_v23  ;;  %v3342_v40 = vpop.f32.mrb[10].mxu1  ;;  %v1725_v23 = vld [vmem:[%s4900_s5] sm:$0xff] }
 0x33c   :  { %v3343_v41 = vpop.f32.mrb[11].mxu1 }
 0x33d   :  { %v1838_v43 = vmul.f32 0.001953125, %v1834_v39  ;;  %v3344_v45 = vadd.f32 %v3343_v41, %v3342_v40 }
 0x33f   :  { %v1835_v46 = vadd.f32 %v3344_v45, %v3332_v27  ;;  %1844 = vperm.xlu0 %3825, %v1838_v43   ;;  %v3345_v47 = vpop.f32.mrb[12].mxu1  ;;  %v1726_v27 = vld [vmem:[%s4900_s5 + $0x8] sm:$0xff] }
 0x340   :  { %v3346_v48 = vpop.f32.mrb[13].mxu1 }
 0x341   :  { %v1839_v49 = vmul.f32 0.001953125, %v1835_v46  ;;  %v3347_v50 = vadd.f32 %v3346_v48, %v3345_v47 }
 0x343   :  { %v1836_v52 = vadd.f32 %v3347_v50, %v3335_v30  ;;  %1849 = vperm.xlu1 %3826, %v1839_v49   ;;  %v3348_v54 = vpop.f32.mrb[14].mxu1 }
 0x344   :  { %v3349_v22 = vpop.f32.mrb[15].mxu1 }
 0x345   :  { %v1840_v0 = vmul.f32 0.001953125, %v1836_v52  ;;  %v3350_v5 = vadd.f32 %v3349_v22, %v3348_v54 }
 0x347   :  { %v1837_v25 = vadd.f32 %v3350_v5, %v3338_v36  ;;  %1854 = vperm.xlu1 %3826, %v1840_v0  }
 0x349   :  { %v1841_v26 = vmul.f32 0.001953125, %v1837_v25 }
 0x34b   :  { %2057 = vperm.xlu1 %3826, %v1725_v23   ;;  %1859 = vperm.xlu0 %3825, %v1841_v26  }
 0x34f   :  { %2062 = vperm.xlu0 %3825, %v1726_v27  }
 0x3be   :  { %v1845_v28 = vpop.permute.xlu0 %1844 }
 0x3bf   :  { %v4546_v29 = vsub.f32 %v4476_v55, %v1845_v28  ;;  %v4549_v30 = vsub.f32 %v4478_v56, %v1845_v28  ;;  %v4576_v43 = vsub.f32 %v4509_v7, %v1845_v28  ;;  %v4589_v47 = vsub.f32 %v4506_v4, %v1845_v28 }
 0x3c1   :  { %v1878_v33 = vmul.f32 %v4546_v29, %v4546_v29  ;;  %v1879_v35 = vmul.f32 %v4549_v30, %v4549_v30  ;;  %v1886_v48 = vmul.f32 %v4589_v47, %v4589_v47 }
 0x3c2   :  { %v1850_v36 = vpop.permute.xlu1 %1849 }
 0x3c3   :  { %v4556_v6 = vsub.f32 %v4482_v60, %v1850_v36  ;;  %v4559_v37 = vsub.f32 %v4485_v61, %v1850_v36  ;;  %1958 = vmatprep.mubr.f32.mxu1 %v1879_v35  ;;  %v4592_v7 = vsub.f32 %v4517_v9, %v1850_v36 }
 0x3c4   :  { %1959 = vmatmul.mubr.f32.vlgmr.msra.gmra.mrb[16].mxu1 %v1878_v33 }
 0x3c5   :  { %v1881_v55 = vmul.f32 %v4559_v37, %v4559_v37  ;;  %v1880_v56 = vmul.f32 %v4556_v6, %v4556_v6  ;;  %v1889_v4 = vmul.f32 %v4592_v7, %v4592_v7 }
 0x3c6   :  { %v1855_v38 = vpop.permute.xlu1 %1854 }
 0x3c7   :  { %v4566_v39 = vsub.f32 %v4490_v62, %v1855_v38  ;;  %v4569_v40 = vsub.f32 %v4493_v63, %v1855_v38  ;;  %1963 = vmatprep.mubr.f32.mxu1 %v1881_v55  ;;  %v4602_v49 = vsub.f32 %v4525_v18, %v1855_v38  ;;  %v4607_v9 = vsub.f32 %v4522_v10, %v1855_v38 }
 0x3c8   :  { %1964 = vmatmul.mubr.f32.gmra.mrb[18].mxu1 %v1880_v56 }
 0x3c9   :  { %v1883_v60 = vmul.f32 %v4569_v40, %v4569_v40  ;;  %v1882_v61 = vmul.f32 %v4566_v39, %v4566_v39  ;;  %v1891_v52 = vmul.f32 %v4602_v49, %v4602_v49  ;;  %v1890_v54 = vmul.f32 %v4607_v9, %v4607_v9 }
 0x3ca   :  { %v1860_v41 = vpop.permute.xlu0 %1859 }
 0x3cb   :  { %v4579_v45 = vsub.f32 %v4498_v1, %v1860_v41  ;;  %v4582_v62 = vsub.f32 %v4501_v3, %v1860_v41  ;;  %1968 = vmatprep.mubr.f32.mxu1 %v1883_v60  ;;  %v1887_v1 = vmul.f32 %v4576_v43, %v4576_v43  ;;  %v4597_v3 = vsub.f32 %v4514_v8, %v1850_v36 }
 0x3cc   :  { %1969 = vmatmul.mubr.f32.gmra.mrb[20].mxu1 %v1882_v61  ;;  %v4612_v8 = vsub.f32 %v4533_v21, %v1860_v41  ;;  %v4617_v18 = vsub.f32 %v4530_v20, %v1860_v41 }
 0x3cd   :  { %v1885_v63 = vmul.f32 %v4582_v62, %v4582_v62  ;;  %v1884_v46 = vmul.f32 %v4579_v45, %v4579_v45  ;;  %v1888_v50 = vmul.f32 %v4597_v3, %v4597_v3 }
 0x3ce   :  { %v1893_v10 = vmul.f32 %v4612_v8, %v4612_v8  ;;  %v1892_v21 = vmul.f32 %v4617_v18, %v4617_v18 }
 0x3cf   :  { %1973 = vmatprep.mubr.f32.mxu1 %v1885_v63 }
 0x3d0   :  { %1974 = vmatmul.mubr.f32.gmra.mrb[22].mxu1 %v1884_v46 }
 0x3d1   :  { %1978 = vmatprep.mubr.f32.mxu1 %v1887_v1 }
 0x3d4   :  { %1979 = vmatmul.mubr.f32.gmra.mrb[24].mxu1 %v1886_v48 }
 0x3d5   :  { %1983 = vmatprep.mubr.f32.mxu1 %v1889_v4 }
 0x3d8   :  { %1984 = vmatmul.mubr.f32.gmra.mrb[26].mxu1 %v1888_v50 }
 0x3d9   :  { %1988 = vmatprep.mubr.f32.mxu1 %v1891_v52 }
 0x3dc   :  { %1989 = vmatmul.mubr.f32.gmra.mrb[28].mxu1 %v1890_v54 }
 0x3dd   :  { %1993 = vmatprep.mubr.f32.mxu1 %v1893_v10 }
 0x3e0   :  { %1994 = vmatmul.mubr.f32.gmra.mrb[30].mxu1 %v1892_v21 }
 0x3e1   :  { %2176 = vmatprep.mubr.f32.mxu1 %v3863_v2 }
 0x497   :  { %v3383_v22 = vpop.f32.mrb[16].mxu1 }
 0x498   :  { %v3384_v0 = vpop.f32.mrb[17].mxu1 }
 0x499   :  { %v3385_v5 = vadd.f32 %v3384_v0, %v3383_v22 }
 0x49b   :  { %v3386_v25 = vpop.f32.mrb[18].mxu1 }
 0x49c   :  { %v3387_v20 = vpop.f32.mrb[19].mxu1 }
 0x49d   :  { %v3388_v23 = vadd.f32 %v3387_v20, %v3386_v25 }
 0x49f   :  { %v3389_v26 = vpop.f32.mrb[20].mxu1 }
 0x4a0   :  { %v3390_v27 = vpop.f32.mrb[21].mxu1 }
 0x4a1   :  { %v3391_v28 = vadd.f32 %v3390_v27, %v3389_v26 }
 0x4a3   :  { %v3392_v33 = vpop.f32.mrb[22].mxu1 }
 0x4a4   :  { %v3393_v35 = vpop.f32.mrb[23].mxu1 }
 0x4a5   :  { %v3394_v36 = vadd.f32 %v3393_v35, %v3392_v33 }
 0x4a7   :  { %v3395_v55 = vpop.f32.mrb[24].mxu1 }
 0x4a8   :  { %v3396_v56 = vpop.f32.mrb[25].mxu1 }
 0x4a9   :  { %v3397_v38 = vadd.f32 %v3396_v56, %v3395_v55 }
 0x4ab   :  { %v1999_v60 = vadd.f32 %v3397_v38, %v3385_v5  ;;  %v3398_v61 = vpop.f32.mrb[26].mxu1 }
 0x4ac   :  { %v3399_v41 = vpop.f32.mrb[27].mxu1 }
 0x4ad   :  { %v2003_v63 = vmul.f32 0.001953125, %v1999_v60  ;;  %v3400_v46 = vadd.f32 %v3399_v41, %v3398_v61  ;;  %v1724_v41 = vld [vmem:[%s4899_s4 + $0x18] sm:$0xff] }
 0x4af   :  { %v2007_v1 = vadd.f32 1e-05, %v2003_v63  ;;  %v2000_v48 = vadd.f32 %v3400_v46, %v3388_v23  ;;  %v3401_v4 = vpop.f32.mrb[28].mxu1  ;;  %v1721_v23 = vld [vmem:[%s4899_s4] sm:$0xff]  ;;  %v1727_v46 = vld [vmem:[%s4900_s5 + $0x10] sm:$0xff] }
 0x4b0   :  { %v3402_v50 = vpop.f32.mrb[29].mxu1 }
 0x4b1   :  { %3827 = vrsqrt.f32 %v2007_v1  ;;  %v2004_v52 = vmul.f32 0.001953125, %v2000_v48  ;;  %v3403_v54 = vadd.f32 %v3402_v50, %v3401_v4  ;;  %v1728_v48 = vld [vmem:[%s4900_s5 + $0x18] sm:$0xff]  ;;  %v2058_v4 = vpop.permute.xlu1 %2057  ;;  %v2063_v50 = vpop.permute.xlu0 %2062 }
 0x4b3   :  { %v2008_v10 = vadd.f32 1e-05, %v2004_v52  ;;  %v2001_v21 = vadd.f32 %v3403_v54, %v3391_v28  ;;  %v3404_v22 = vpop.f32.mrb[30].mxu1  ;;  %v1722_v28 = vld [vmem:[%s4899_s4 + $0x8] sm:$0xff] }
 0x4b4   :  { %v3405_v0 = vpop.f32.mrb[31].mxu1 }
 0x4b5   :  { %3829 = vrsqrt.f32 %v2008_v10  ;;  %v2005_v25 = vmul.f32 0.001953125, %v2001_v21  ;;  %v3406_v20 = vadd.f32 %v3405_v0, %v3404_v22 }
 0x4b7   :  { %v2009_v26 = vadd.f32 1e-05, %v2005_v25  ;;  %v2002_v5 = vadd.f32 %v3406_v20, %v3394_v36  ;;  %v1723_v36 = vld [vmem:[%s4899_s4 + $0x10] sm:$0xff] }
 0x4b9   :  { %3831 = vrsqrt.f32 %v2009_v26  ;;  %v2006_v27 = vmul.f32 0.001953125, %v2002_v5 }
 0x4bb   :  { %v3828_v33 = vpop.eup %3827  ;;  %v2010_v35 = vadd.f32 1e-05, %v2006_v27 }
 0x4bc   :  { %v2015_v55 = vmul.f32 %v3828_v33, %v1721_v23 }
 0x4bd   :  { %3833 = vrsqrt.f32 %v2010_v35 }
 0x4be   :  { %2021 = vperm.xlu1 %3826, %v2015_v55  }
 0x4bf   :  { %v3830_v56 = vpop.eup %3829 }
 0x4c0   :  { %v2016_v38 = vmul.f32 %v3830_v56, %v1722_v28 }
 0x4c2   :  { %2026 = vperm.xlu0 %3825, %v2016_v38  }
 0x4c3   :  { %v3832_v60 = vpop.eup %3831 }
 0x4c4   :  { %v2017_v61 = vmul.f32 %v3832_v60, %v1723_v36 }
 0x4c6   :  { %2031 = vperm.xlu1 %3826, %v2017_v61  }
 0x4c7   :  { %v3834_v63 = vpop.eup %3833 }
 0x4c8   :  { %v2018_v1 = vmul.f32 %v3834_v63, %v1724_v41 }
 0x4ca   :  { %2067 = vperm.xlu1 %3826, %v1727_v46   ;;  %2036 = vperm.xlu0 %3825, %v2018_v1  }
 0x4ce   :  { %2072 = vperm.xlu0 %3825, %v1728_v48  }
 0x53d   :  { %v2022_v52 = vpop.permute.xlu1 %2021 }
 0x53e   :  { %v2039_v54 = vmul.f32 %v2022_v52, %v4546_v29  ;;  %v2040_v10 = vmul.f32 %v2022_v52, %v4549_v30 }
 0x540   :  { %v2075_v22 = vadd.f32 %v2058_v4, %v2039_v54  ;;  %v2076_v0 = vadd.f32 %v2058_v4, %v2040_v10 }
 0x541   :  { %v2027_v21 = vpop.permute.xlu0 %2026 }
 0x542   :  { %v2041_v25 = vmul.f32 %v2027_v21, %v4556_v6  ;;  %v2042_v20 = vmul.f32 %v2027_v21, %v4559_v37  ;;  %v2091_v23 = vmax.f32 %v2075_v22, 0.0  ;;  %v2092_v33 = vmax.f32 %v2076_v0, 0.0 }
 0x543   :  { %v2050_v35 = vmul.f32 %v2027_v21, %v4592_v7  ;;  %v2048_v6 = vmul.f32 %v2022_v52, %v4576_v43  ;;  %v2049_v60 = vmul.f32 %v2027_v21, %v4597_v3 }
 0x544   :  { %v2077_v26 = vadd.f32 %v2063_v50, %v2041_v25  ;;  %v2078_v5 = vadd.f32 %v2063_v50, %v2042_v20 }
 0x545   :  { %v2032_v27 = vpop.permute.xlu1 %2031  ;;  %v2086_v61 = vadd.f32 %v2063_v50, %v2050_v35  ;;  %v2084_v48 = vadd.f32 %v2058_v4, %v2048_v6  ;;  %v2085_v3 = vadd.f32 %v2063_v50, %v2049_v60  ;;  %v3283_v60 = vld [vmem:[%s4897_s2 + $0x18] sm:$0x3f] }
 0x546   :  { %v2093_v55 = vmax.f32 %v2077_v26, 0.0  ;;  %v2094_v28 = vmax.f32 %v2078_v5, 0.0  ;;  %v2043_v30 = vmul.f32 %v2032_v27, %v4566_v39  ;;  %v2044_v37 = vmul.f32 %v2032_v27, %v4569_v40 }
 0x547   :  { %v2047_v39 = vmul.f32 %v2022_v52, %v4589_v47  ;;  %v2102_v10 = vmax.f32 %v2086_v61, 0.0  ;;  %v2052_v21 = vmul.f32 %v2032_v27, %v4602_v49  ;;  %v2100_v5 = vmax.f32 %v2084_v48, 0.0  ;;  %v3285_v61 = vld [vmem:[%s4897_s2 + $0x20] sm:$0x3f] }
 0x548   :  { %v4649_v56 = vpack.c.bf16 %v2094_v28, %v2092_v33  ;;  %v4651_v29 = vpack.c.bf16 %v2093_v55, %v2091_v23  ;;  %v2051_v50 = vmul.f32 %v2032_v27, %v4607_v9  ;;  %v2107_v27 = vld [vmem:[%s4897_s2] sm:$0x3f] }
 0x549   :  { %v2068_v38 = vpop.permute.xlu1 %2067  ;;  %v2037_v36 = vpop.permute.xlu0 %2036  ;;  %v4670_v35 = vpack.c.bf16 %v2102_v10, %v2100_v5 }
 0x54a   :  { %v2079_v41 = vadd.f32 %v2068_v38, %v2043_v30  ;;  %3510 = vmatprep.subr.bf16.mxu1 %v4649_v56  ;;  %v2080_v7 = vadd.f32 %v2068_v38, %v2044_v37  ;;  %v2045_v63 = vmul.f32 %v2037_v36, %v4579_v45  ;;  %v2046_v46 = vmul.f32 %v2037_v36, %v4582_v62  ;;  %v3281_v37 = vld [vmem:[%s4897_s2 + $0x10] sm:$0x3f] }
 0x54b   :  { %3512 = vmatpush1.bf16.msra.mxu1 %v4651_v29  ;;  %v2054_v43 = vmul.f32 %v2037_v36, %v4612_v8  ;;  %v2083_v62 = vadd.f32 %v2058_v4, %v2047_v39  ;;  %v2053_v26 = vmul.f32 %v2037_v36, %v4617_v18  ;;  %v2088_v47 = vadd.f32 %v2068_v38, %v2052_v21 }
 0x54c   :  { %v2095_v22 = vmax.f32 %v2079_v41, 0.0  ;;  %v2096_v0 = vmax.f32 %v2080_v7, 0.0  ;;  %v2101_v8 = vmax.f32 %v2085_v3, 0.0  ;;  %v2087_v28 = vadd.f32 %v2068_v38, %v2051_v50  ;;  %v3279_v38 = vld [vmem:[%s4897_s2 + $0x8] sm:$0x3f] }
 0x54d   :  { %v2073_v1 = vpop.permute.xlu0 %2072  ;;  %v2099_v55 = vmax.f32 %v2083_v62, 0.0  ;;  %v2104_v18 = vmax.f32 %v2088_v47, 0.0  ;;  %v3287_v41 = vld [vmem:[%s4897_s2 + $0x28] sm:$0x3f]  ;;  %v3289_v7 = vld [vmem:[%s4897_s2 + $0x30] sm:$0x3f] }
 0x54e   :  { %v2081_v40 = vadd.f32 %v2073_v1, %v2045_v63  ;;  %v2082_v54 = vadd.f32 %v2073_v1, %v2046_v46  ;;  %v2090_v25 = vadd.f32 %v2073_v1, %v2054_v43  ;;  %v2089_v33 = vadd.f32 %v2073_v1, %v2053_v26  ;;  %v3291_v63 = vld [vmem:[%s4897_s2 + $0x38] sm:$0x3f] }
 0x54f   :  { %v4675_v4 = vpack.c.bf16 %v2101_v8, %v2099_v55  ;;  %v2103_v6 = vmax.f32 %v2087_v28, 0.0 }
 0x550   :  { %v2097_v45 = vmax.f32 %v2081_v40, 0.0  ;;  %v2098_v20 = vmax.f32 %v2082_v54, 0.0  ;;  %v2106_v49 = vmax.f32 %v2090_v25, 0.0  ;;  %v2105_v30 = vmax.f32 %v2089_v33, 0.0 }
 0x552   :  { %v4665_v52 = vpack.c.bf16 %v2098_v20, %v2096_v0  ;;  %v4667_v23 = vpack.c.bf16 %v2097_v45, %v2095_v22  ;;  %v4677_v36 = vpack.c.bf16 %v2106_v49, %v2104_v18  ;;  %v4681_v9 = vpack.c.bf16 %v2105_v30, %v2103_v6 }
 0x554   :  { %3514 = vmatprep.subr.bf16.mxu1 %v4665_v52 }
 0x555   :  { %3516 = vmatpush1.bf16.msra.mxu1 %v4667_v23 }
 0x556   :  { %3518 = vmatprep.subr.bf16.mxu1 %v4670_v35 }
 0x559   :  { %3520 = vmatpush1.bf16.msra.mxu1 %v4675_v4 }
 0x55a   :  { %3522 = vmatprep.subr.bf16.mxu1 %v4677_v36 }
 0x55d   :  { %3524 = vmatpush1.bf16.msra.mxu1 %v4681_v9 }
 0x55e   :  { %3526 = vmatprep.subr.bf16.mxu1 %v4649_v56 }
 0x560   :  { %3278 = vmatmul.mubr.msk.f32.vlgmr.msra.gmra.mrb[32].mxu1 %vm2108_vm10, %v2107_v27 }
 0x561   :  { %3528 = vmatpush1.bf16.msra.mxu1 %v4651_v29  ;;  %2266 = vmatprep.mubr.f32.mxu1 %v3863_v2 }
 0x562   :  { %3530 = vmatprep.subr.bf16.mxu1 %v4665_v52 }
 0x565   :  { %3532 = vmatpush1.bf16.msra.mxu1 %v4667_v23 }
 0x566   :  { %3534 = vmatprep.subr.bf16.mxu1 %v4670_v35 }
 0x569   :  { %3536 = vmatpush1.bf16.msra.mxu1 %v4675_v4 }
 0x56a   :  { %3538 = vmatprep.subr.bf16.mxu1 %v4677_v36 }
 0x56d   :  { %3540 = vmatpush1.bf16.msra.mxu1 %v4681_v9 }
 0x56e   :  { %3542 = vmatprep.subr.bf16.mxu1 %v4649_v56 }
 0x570   :  { %3280 = vmatmul.mubr.msk.f32.vlgmr.msra.gmra.mrb[34].mxu1 %vm2108_vm10, %v3279_v38 }
 0x571   :  { %3544 = vmatpush1.bf16.msra.mxu1 %v4651_v29  ;;  %2356 = vmatprep.mubr.f32.mxu1 %v3863_v2 }
 0x572   :  { %3546 = vmatprep.subr.bf16.mxu1 %v4665_v52 }
 0x575   :  { %3548 = vmatpush1.bf16.msra.mxu1 %v4667_v23 }
 0x576   :  { %3550 = vmatprep.subr.bf16.mxu1 %v4670_v35 }
 0x579   :  { %3552 = vmatpush1.bf16.msra.mxu1 %v4675_v4 }
 0x57a   :  { %3554 = vmatprep.subr.bf16.mxu1 %v4677_v36 }
 0x57d   :  { %3556 = vmatpush1.bf16.msra.mxu1 %v4681_v9 }
 0x57e   :  { %3558 = vmatprep.subr.bf16.mxu1 %v4649_v56 }
 0x580   :  { %3282 = vmatmul.mubr.msk.f32.vlgmr.msra.gmra.mrb[36].mxu1 %vm2108_vm10, %v3281_v37 }
 0x581   :  { %3560 = vmatpush1.bf16.msra.mxu1 %v4651_v29  ;;  %2446 = vmatprep.mubr.f32.mxu1 %v3863_v2 }
 0x582   :  { %3562 = vmatprep.subr.bf16.mxu1 %v4665_v52 }
 0x585   :  { %3564 = vmatpush1.bf16.msra.mxu1 %v4667_v23 }
 0x586   :  { %3566 = vmatprep.subr.bf16.mxu1 %v4670_v35 }
 0x589   :  { %3568 = vmatpush1.bf16.msra.mxu1 %v4675_v4 }
 0x58a   :  { %3570 = vmatprep.subr.bf16.mxu1 %v4677_v36 }
 0x58d   :  { %3572 = vmatpush1.bf16.msra.mxu1 %v4681_v9 }
 0x58e   :  { %3574 = vmatprep.subr.bf16.mxu1 %v4649_v56 }
 0x590   :  { %3284 = vmatmul.mubr.msk.f32.vlgmr.msra.gmra.mrb[38].mxu1 %vm2108_vm10, %v3283_v60 }
 0x591   :  { %3576 = vmatpush1.bf16.msra.mxu1 %v4651_v29  ;;  %2536 = vmatprep.mubr.f32.mxu1 %v3863_v2 }
 0x592   :  { %3578 = vmatprep.subr.bf16.mxu1 %v4665_v52 }
 0x595   :  { %3580 = vmatpush1.bf16.msra.mxu1 %v4667_v23 }
 0x596   :  { %3582 = vmatprep.subr.bf16.mxu1 %v4670_v35 }
 0x599   :  { %3584 = vmatpush1.bf16.msra.mxu1 %v4675_v4 }
 0x59a   :  { %3586 = vmatprep.subr.bf16.mxu1 %v4677_v36 }
 0x59d   :  { %3588 = vmatpush1.bf16.msra.mxu1 %v4681_v9 }
 0x59e   :  { %3590 = vmatprep.subr.bf16.mxu1 %v4649_v56 }
 0x5a0   :  { %3286 = vmatmul.mubr.msk.f32.vlgmr.msra.gmra.mrb[40].mxu1 %vm2108_vm10, %v3285_v61 }
 0x5a1   :  { %3592 = vmatpush1.bf16.msra.mxu1 %v4651_v29  ;;  %2616 = vmatprep.mubr.f32.mxu1 %v3863_v2 }
 0x5a2   :  { %3594 = vmatprep.subr.bf16.mxu1 %v4665_v52 }
 0x5a5   :  { %3596 = vmatpush1.bf16.msra.mxu1 %v4667_v23 }
 0x5a6   :  { %3598 = vmatprep.subr.bf16.mxu1 %v4670_v35 }
 0x5a9   :  { %3600 = vmatpush1.bf16.msra.mxu1 %v4675_v4 }
 0x5aa   :  { %3602 = vmatprep.subr.bf16.mxu1 %v4677_v36 }
 0x5ad   :  { %3604 = vmatpush1.bf16.msra.mxu1 %v4681_v9 }
 0x5ae   :  { %3606 = vmatprep.subr.bf16.mxu1 %v4649_v56 }
 0x5b0   :  { %3288 = vmatmul.mubr.msk.f32.vlgmr.msra.gmra.mrb[42].mxu1 %vm2108_vm10, %v3287_v41 }
 0x5b1   :  { %3608 = vmatpush1.bf16.msra.mxu1 %v4651_v29  ;;  %2706 = vmatprep.mubr.f32.mxu1 %v3863_v2 }
 0x5b2   :  { %3610 = vmatprep.subr.bf16.mxu1 %v4665_v52 }
 0x5b5   :  { %3612 = vmatpush1.bf16.msra.mxu1 %v4667_v23 }
 0x5b6   :  { %3614 = vmatprep.subr.bf16.mxu1 %v4670_v35 }
 0x5b9   :  { %3616 = vmatpush1.bf16.msra.mxu1 %v4675_v4 }
 0x5ba   :  { %3618 = vmatprep.subr.bf16.mxu1 %v4677_v36 }
 0x5bd   :  { %3620 = vmatpush1.bf16.msra.mxu1 %v4681_v9 }
 0x5be   :  { %3622 = vmatprep.subr.bf16.mxu1 %v4649_v56 }
 0x5c0   :  { %3290 = vmatmul.mubr.msk.f32.vlgmr.msra.gmra.mrb[44].mxu1 %vm2108_vm10, %v3289_v7 }
 0x5c1   :  { %3624 = vmatpush1.bf16.msra.mxu1 %v4651_v29  ;;  %2796 = vmatprep.mubr.f32.mxu1 %v3863_v2 }
 0x5c2   :  { %3626 = vmatprep.subr.bf16.mxu1 %v4665_v52 }
 0x5c5   :  { %3628 = vmatpush1.bf16.msra.mxu1 %v4667_v23 }
 0x5c6   :  { %3630 = vmatprep.subr.bf16.mxu1 %v4670_v35 }
 0x5c9   :  { %3632 = vmatpush1.bf16.msra.mxu1 %v4675_v4 }
 0x5ca   :  { %3634 = vmatprep.subr.bf16.mxu1 %v4677_v36 }
 0x5cd   :  { %3636 = vmatpush1.bf16.msra.mxu1 %v4681_v9 }
 0x5ce   :  { %3638 = vmatprep.subr.bf16.mxu1 %v4649_v56  ;;  %v3293_v56 = vld [vmem:[%s4897_s2 + $0x40] sm:$0x3f] }
 0x5d0   :  { %3292 = vmatmul.mubr.msk.f32.vlgmr.msra.gmra.mrb[46].mxu1 %vm2108_vm10, %v3291_v63 }
 0x5d1   :  { %3640 = vmatpush1.bf16.msra.mxu1 %v4651_v29  ;;  %2886 = vmatprep.mubr.f32.mxu1 %v3863_v2 }
 0x5d2   :  { %3642 = vmatprep.subr.bf16.mxu1 %v4665_v52 }
 0x5d5   :  { %3644 = vmatpush1.bf16.msra.mxu1 %v4667_v23 }
 0x5d6   :  { %3646 = vmatprep.subr.bf16.mxu1 %v4670_v35 }
 0x5d9   :  { %3648 = vmatpush1.bf16.msra.mxu1 %v4675_v4 }
 0x5da   :  { %3650 = vmatprep.subr.bf16.mxu1 %v4677_v36 }
 0x5dd   :  { %3652 = vmatpush1.bf16.msra.mxu1 %v4681_v9 }
 0x5de   :  { %3653 = vmatprep.subr.bf16.mxu1 %v3870_v58 }
 0x5e0   :  { %3294 = vmatmul.mubr.msk.f32.vlgmr.msra.gmra.mrb[48].mxu1 %vm2108_vm10, %v3293_v56 }
 0x5e1   :  { %3654 = vmatpush3.bf16.msra.mxu1 %v3870_v58 }
 0x5e2   :  { %3655 = vmatprep.subr.bf16.mxu1 %v3870_v58 }
 0x5e5   :  { %3656 = vmatpush3.bf16.msra.mxu1 %v3870_v58 }
 0x5e6   :  { %3657 = vmatprep.subr.bf16.mxu1 %v3870_v58 }
 0x5e9   :  { %3658 = vmatpush3.bf16.msra.mxu1 %v3870_v58 }
 0x5ea   :  { %3659 = vmatprep.subr.bf16.mxu1 %v3870_v58 }
 0x5ed   :  { %3660 = vmatpush3.bf16.msra.mxu1 %v3870_v58 }
 0x5ee   :  { %3661 = vmatprep.subr.bf16.mxu1 %v3870_v58 }
 0x5f1   :  { %3662 = vmatpush3.bf16.msra.mxu1 %v3870_v58 }
 0x5f2   :  { %3663 = vmatprep.subr.bf16.mxu1 %v3870_v58 }
 0x5f5   :  { %3664 = vmatpush3.bf16.msra.mxu1 %v3870_v58 }
 0x5f6   :  { %3665 = vmatprep.subr.bf16.mxu1 %v3870_v58 }
 0x5f9   :  { %3666 = vmatpush3.bf16.msra.mxu1 %v3870_v58 }
 0x5fa   :  { %3667 = vmatprep.subr.bf16.mxu1 %v3870_v58 }
 0x5fd   :  { %3668 = vmatpush3.bf16.msra.mxu1 %v3870_v58 }
 0x5fe   :  { %3669 = vmatprep.subr.bf16.mxu1 %v3870_v58 }
 0x633   :  { %v2178_v2 = vpop.f32.mrb[32].mxu1 }
 0x634   :  { %2185 = vrot.lane.b32.xlu1 %v2178_v2, %s3862_s30  ;;  %v2180_v29 = vpop.f32.mrb[33].mxu1 }
 0x635   :  { %2187 = vrot.lane.b32.xlu0 %v2180_v29, %s3862_s30 }
 0x643   :  { %v2268_v46 = vpop.f32.mrb[34].mxu1 }
 0x644   :  { %2275 = vrot.lane.b32.xlu1 %v2268_v46, %s3861_s29  ;;  %v2270_v39 = vpop.f32.mrb[35].mxu1 }
 0x645   :  { %2277 = vrot.lane.b32.xlu0 %v2270_v39, %s3861_s29 }
 0x653   :  { %v2358_v1 = vpop.f32.mrb[36].mxu1 }
 0x654   :  { %2365 = vrot.lane.b32.xlu1 %v2358_v1, %s3864_s11  ;;  %v2360_v48 = vpop.f32.mrb[37].mxu1 }
 0x655   :  { %2367 = vrot.lane.b32.xlu0 %v2360_v48, %s3864_s11  ;;  %s3872_s11 = smov [#allocation2]  }
 0x663   :  { %v2448_v43 = vpop.f32.mrb[38].mxu1 }
 0x664   :  { %2455 = vrot.lane.b32.xlu1 %v2448_v43, %s3865_s12  ;;  %v2450_v40 = vpop.f32.mrb[39].mxu1 }
 0x665   :  { %2457 = vrot.lane.b32.xlu0 %v2450_v40, %s3865_s12  ;;  %s3108_s12 = sshll.u32 %s3872_s11, 4  ;;  %s3109_s12 = int_to_ptr.vmem [resolvable:$true] %s3108_s12 }
 0x666   :  { %p3842_p1 = scmp.lt.s32.totalorder %s3109_s12, %s3109_s12 }
 0x673   :  { %v2538_v54 = vpop.f32.mrb[40].mxu1 }
 0x674   :  { %v2540_v3 = vpop.f32.mrb[41].mxu1 }
 0x683   :  { %v2618_v10 = vpop.f32.mrb[42].mxu1 }
 0x684   :  { %v2620_v21 = vpop.f32.mrb[43].mxu1  ;;  %2625 = vrot.lane.b32.xlu0 %v2618_v10, %s3866_s0 }
 0x685   :  { %2627 = vrot.lane.b32.xlu1 %v2620_v21, %s3866_s0 }
 0x693   :  { %v2708_v22 = vpop.f32.mrb[44].mxu1 }
 0x694   :  { %v2710_v0 = vpop.f32.mrb[45].mxu1  ;;  %2715 = vrot.lane.b32.xlu0 %v2708_v22, %s3867_s13 }
 0x695   :  { %2717 = vrot.lane.b32.xlu1 %v2710_v0, %s3867_s13 }
 0x6a3   :  { %v2798_v25 = vpop.f32.mrb[46].mxu1 }
 0x6a4   :  { %v2800_v45 = vpop.f32.mrb[47].mxu1  ;;  %2805 = vrot.lane.b32.xlu0 %v2798_v25, %s3868_s14 }
 0x6a5   :  { %2807 = vrot.lane.b32.xlu1 %v2800_v45, %s3868_s14 }
 0x6a6   :  { %v2186_v26 = vpop.permute.xlu1 %2185 }
 0x6a7   :  { %v2188_v5 = vpop.permute.xlu0 %2187  ;;  %v2192_v55 = vsel %vm38_vm1, 0.0, %v2186_v26 }
 0x6a8   :  { %v2189_v28 = vsel %vm38_vm1, %v2186_v26, %v2188_v5  ;;  %v2193_v37 = vmul.f32 %v2192_v55, %v3981_v14 }
 0x6a9   :  { %v2194_v60 = vmul.f32 %v2189_v28, %v3975_v12 }
 0x6b3   :  { %v2888_v20 = vpop.f32.mrb[48].mxu1 }
 0x6b4   :  { %v2890_v62 = vpop.f32.mrb[49].mxu1  ;;  %2895 = vrot.lane.b32.xlu0 %v2888_v20, %s3869_s15 }
 0x6b5   :  { %2897 = vrot.lane.b32.xlu1 %v2890_v62, %s3869_s15 }
 0x6b6   :  { %v2276_v47 = vpop.permute.xlu1 %2275 }
 0x6b7   :  { %v2278_v52 = vpop.permute.xlu0 %2277  ;;  %v2282_v35 = vsel %vm69_vm0, 0.0, %v2276_v47 }
 0x6b8   :  { %v2279_v49 = vsel %vm69_vm0, %v2276_v47, %v2278_v52  ;;  %v2283_v30 = vmul.f32 %v2282_v35, %v3978_v13  ;;  %v2908_v35 = vld [vmem:[%s4902_s7] sm:$0x7] }
 0x6b9   :  { %v2284_v36 = vmul.f32 %v2279_v49, %v3972_v11  ;;  %v3088_v28 = vrot.slane %v2908_v35, 5 }
 0x6ba   :  { %v2285_v7 = vadd.f32 %v2283_v30, %v2193_v37 }
 0x6bb   :  { %v2286_v63 = vadd.f32 %v2284_v36, %v2194_v60 }
 0x6c6   :  { %v2366_v23 = vpop.permute.xlu1 %2365 }
 0x6c7   :  { %v2368_v8 = vpop.permute.xlu0 %2367  ;;  %v2372_v18 = vsel %vm390_vm3, 0.0, %v2366_v23 }
 0x6c8   :  { %v2369_v4 = vsel %vm390_vm3, %v2366_v23, %v2368_v8  ;;  %v2373_v61 = vmul.f32 %v2372_v18, %v4046_v42 }
 0x6c9   :  { %v2374_v41 = vmul.f32 %v2369_v4, %v3993_v24  ;;  %v3090_v4 = vsel %vm2987_vm11, %v2908_v35, %v3088_v28 }
 0x6ca   :  { %v2375_v29 = vadd.f32 %v2373_v61, %v2285_v7 }
 0x6cb   :  { %v2376_v46 = vadd.f32 %v2374_v41, %v2286_v63  ;;  %v2907_v63 = vld [vmem:[%s4901_s6] sm:$0x7]  ;;  %s3837_s6 = scalar_lea.vmem %s3109_s12, 256 }
 0x6cc   :  { %p3838_p0 = scmp.ne.s32.totalorder %s3109_s12, %s3837_s6  ;;  %p3843_p2 = scmp.lt.s32.totalorder %s3837_s6, %s3837_s6 }
 0x6ce   :  { %p3844_p3 = por %p3843_p2, %p3842_p1 }
 0x6d0   :  { %p3845_p4 = pnand %p3844_p3, %p3838_p0 }
 0x6d6   :  { %v2456_v50 = vpop.permute.xlu1 %2455 }
 0x6d7   :  { %v2458_v33 = vpop.permute.xlu0 %2457  ;;  %v2462_v27 = vsel %vm582_vm5, 0.0, %v2456_v50 }
 0x6d8   :  { %v2459_v38 = vsel %vm582_vm5, %v2456_v50, %v2458_v33  ;;  %v2463_v13 = vmul.f32 %v2462_v27, %v4101_v57  ;;  %v2543_v57 = vmul.f32 %v2538_v54, %v4156_v16 }
 0x6d9   :  { %v2464_v11 = vmul.f32 %v2459_v38, %v4050_v44  ;;  %v2544_v44 = vmul.f32 %v2540_v3, %v4105_v59 }
 0x6da   :  { %v2465_v1 = vadd.f32 %v2463_v13, %v2375_v29 }
 0x6db   :  { %v2466_v12 = vadd.f32 %v2464_v11, %v2376_v46 }
 0x6dc   :  { %v2545_v0 = vadd.f32 %v2543_v57, %v2465_v1 }
 0x6dd   :  { %v2546_v25 = vadd.f32 %v2544_v44, %v2466_v12 }
 0x6f6   :  { %v2626_v6 = vpop.permute.xlu0 %2625 }
 0x6f7   :  { %v2628_v9 = vpop.permute.xlu1 %2627 }
 0x6f8   :  { %v2629_v39 = vsel %vm957_vm6, %v2626_v6, %v2628_v9  ;;  %v2632_v14 = vsel %vm957_vm6, %v2628_v9, 0.0 }
 0x6f9   :  { %v2633_v40 = vmul.f32 %v2629_v39, %v4211_v32  ;;  %v2634_v10 = vmul.f32 %v2632_v14, %v4159_v17 }
 0x6fb   :  { %v2635_v62 = vadd.f32 %v2633_v40, %v2545_v0  ;;  %v2636_v26 = vadd.f32 %v2634_v10, %v2546_v25 }
 0x706   :  { %v2716_v56 = vpop.permute.xlu0 %2715 }
 0x707   :  { %v2718_v2 = vpop.permute.xlu1 %2717 }
 0x708   :  { %v2719_v24 = vsel %vm1149_vm7, %v2716_v56, %v2718_v2  ;;  %v2722_v43 = vsel %vm1149_vm7, %v2718_v2, 0.0 }
 0x709   :  { %v2723_v45 = vmul.f32 %v2719_v24, %v4266_v51  ;;  %v2724_v20 = vmul.f32 %v2722_v43, %v4215_v34 }
 0x70b   :  { %v2725_v32 = vadd.f32 %v2723_v45, %v2635_v62  ;;  %v2726_v3 = vadd.f32 %v2724_v20, %v2636_v26 }
 0x716   :  { %v2806_v48 = vpop.permute.xlu0 %2805 }
 0x717   :  { %v2808_v42 = vpop.permute.xlu1 %2807 }
 0x718   :  { %v2809_v21 = vsel %vm1341_vm8, %v2806_v48, %v2808_v42  ;;  %v2812_v22 = vsel %vm1341_vm8, %v2808_v42, 0.0 }
 0x719   :  { %v2813_v16 = vmul.f32 %v2809_v21, %v4336_v15  ;;  %v2814_v59 = vmul.f32 %v2812_v22, %v4270_v53 }
 0x71b   :  { %v2815_v52 = vadd.f32 %v2813_v16, %v2725_v32  ;;  %v2816_v23 = vadd.f32 %v2814_v59, %v2726_v3 }
 0x726   :  { %v2896_v54 = vpop.permute.xlu0 %2895 }
 0x727   :  { %v2898_v17 = vpop.permute.xlu1 %2897 }
 0x728   :  { %v2899_v5 = vsel %vm1533_vm9, %v2896_v54, %v2898_v17  ;;  %v2902_v47 = vsel %vm1533_vm9, %v2898_v17, 0.0 }
 0x729   :  { %v2903_v51 = vmul.f32 %v2899_v5, %v4390_v31  ;;  %v2904_v34 = vmul.f32 %v2902_v47, %v4340_v19 }
 0x72b   :  { %v2905_v8 = vadd.f32 %v2903_v51, %v2815_v52  ;;  %v2906_v50 = vadd.f32 %v2904_v34, %v2816_v23 }
 0x72d   :  { %2973 = vmatprep.mubr.f32.mxu1 %v2906_v50 }
 0x72e   :  { %2974 = vmatmul.mubr.f32.vlgmr.msra.gmra.mrb[50].mxu1 %v2905_v8 }
 0x72f   :  { %3670 = vmatpush3.bf16.msra.mxu1 %v3870_v58 }
 0x730   :  { %3671 = vmatprep.subr.bf16.mxu1 %v3870_v58 }
 0x733   :  { %3672 = vmatpush3.bf16.msra.mxu1 %v3870_v58 }
 0x734   :  { %3673 = vmatprep.subr.bf16.mxu1 %v3870_v58 }
 0x737   :  { %3674 = vmatpush3.bf16.msra.mxu1 %v3870_v58 }
 0x738   :  { %3675 = vmatprep.subr.bf16.mxu1 %v3870_v58 }
 0x73b   :  { %3676 = vmatpush3.bf16.msra.mxu1 %v3870_v58 }
 0x73c   :  { %3677 = vmatprep.subr.bf16.mxu1 %v3870_v58 }
 0x73f   :  { %3678 = vmatpush3.bf16.msra.mxu1 %v3870_v58 }
 0x740   :  { %3679 = vmatprep.subr.bf16.mxu1 %v3870_v58 }
 0x743   :  { %3680 = vmatpush3.bf16.msra.mxu1 %v3870_v58 }
 0x744   :  { %3681 = vmatprep.subr.bf16.mxu1 %v3870_v58 }
 0x747   :  { %3682 = vmatpush3.bf16.msra.mxu1 %v3870_v58 }
 0x748   :  { %3683 = vmatprep.subr.bf16.mxu1 %v3870_v58 }
 0x74b   :  { %3684 = vmatpush3.bf16.msra.mxu1 %v3870_v58 }
 0x801   :  { %v3439_v53 = vpop.f32.mrb[50].mxu1 }
 0x802   :  { %v3440_v15 = vpop.f32.mrb[51].mxu1 }
 0x803   :  { %v3441_v19 = vadd.f32 %v3440_v15, %v3439_v53 }
 0x805   :  { %v2980_v31 = vrot.slane %v3441_v19, 3 }
 0x807   :  { %v2982_v33 = vadd.f32 %v3441_v19, %v2980_v31 }
 0x809   :  { %v2983_v49 = vmul.f32 0.001953125, %v2982_v33 }
 0x80b   :  { %v2985_v55 = vrot.slane %v2983_v49, 5 }
 0x80d   :  { %v2988_v18 = vsel %vm2987_vm11, %v2983_v49, %v2985_v55 }
 0x80e   :  { %2991 = vperm.xlu1 %3826, %v2988_v18  }
 0x812   :  { %3093 = vperm.xlu1 %3826, %v3090_v4  }
 0x88d   :  { %v2992_v58 = vpop.permute.xlu1 %2991 }
 0x88e   :  { %v2994_v30 = vsub.f32 %v2905_v8, %v2992_v58  ;;  %v2995_v36 = vsub.f32 %v2906_v50, %v2992_v58 }
 0x890   :  { %v2996_v6 = vmul.f32 %v2994_v30, %v2994_v30  ;;  %v2997_v9 = vmul.f32 %v2995_v36, %v2995_v36 }
 0x891   :  { %v3094_v14 = vpop.permute.xlu1 %3093 }
 0x892   :  { %3062 = vmatprep.mubr.f32.mxu1 %v2997_v9 }
 0x893   :  { %3063 = vmatmul.mubr.f32.vlgmr.msra.gmra.mrb[52].mxu1 %v2996_v6 }
 0x966   :  { %v3474_v27 = vpop.f32.mrb[52].mxu1 }
 0x967   :  { %v3475_v38 = vpop.f32.mrb[53].mxu1 }
 0x968   :  { %v3476_v37 = vadd.f32 %v3475_v38, %v3474_v27 }
 0x96a   :  { %v3069_v60 = vrot.slane %v3476_v37, 3 }
 0x96c   :  { %v3071_v61 = vadd.f32 %v3476_v37, %v3069_v60 }
 0x96e   :  { %v3072_v41 = vmul.f32 0.001953125, %v3071_v61 }
 0x970   :  { %v3073_v7 = vadd.f32 1e-05, %v3072_v41 }
 0x972   :  { %3835 = vrsqrt.f32 %v3073_v7 }
 0x97c   :  { %v3836_v13 = vpop.eup %3835 }
 0x97d   :  { %v3075_v11 = vmul.f32 %v3836_v13, %v2907_v63 }
 0x97f   :  { %v3077_v56 = vrot.slane %v3075_v11, 5 }
 0x981   :  { %v3079_v2 = vsel %vm2987_vm11, %v3075_v11, %v3077_v56 }
 0x982   :  { %3082 = vperm.xlu0 %3825, %v3079_v2  }
 0xa01   :  { %v3083_v29 = vpop.permute.xlu0 %3082 }
 0xa02   :  { %v3085_v46 = vmul.f32 %v3083_v29, %v2994_v30  ;;  %v3086_v39 = vmul.f32 %v3083_v29, %v2995_v36 }
 0xa04   :  { %v3096_v1 = vadd.f32 %v3094_v14, %v3085_v46  ;;  %v3097_v12 = vadd.f32 %v3094_v14, %v3086_v39 }
 0xa06   :  { %v3098_v48 = vmax.f32 %v3096_v1, 0.0  ;;  %v3099_v42 = vmax.f32 %v3097_v12, 0.0 }
 0xa08   :  { %3100 = vst [vmem:[#allocation2] sm:$0x3f] %v3098_v48  ;;  %3101 = vst [vmem:[#allocation2 + $0x8] sm:$0x3f] %v3099_v42 }
 0xa09   :  { %3848 = shalt.err (!%p3845_p4)
}
 0xa0a   :  { %s3849_s14 = scalar_lea.hbm %s4903_s8, 256 }
 0xa0b   :  { %p3850_p5 = scmp.ne.s32.totalorder %s4903_s8, %s3849_s14  ;;  %p3853_p6 = scmp.lt.u32.totalorder %s3849_s14, %s4903_s8 }
 0xa0d   :  { %p3855_p7 = pnand %p3853_p6, %p3850_p5 }
 0xa0f   :  { %3858 = shalt.err (!%p3855_p7)
}
 0xa10   :  { %3111 = dma.vmem_to_hbm [thread:$0]  %s3109_s12, 256, %s4903_s8, [#allocation3]  }
 0xa11   :  { %3859 = dma.done.wait [#allocation3], 256  }
 0xa12   :  { %3860 = vsyncadd [#allocation3], 4294967040 }
 0xa13   :  { %3115 = vsyncpa [#allocation3], 1 }

</bundles_post_ra>
